<compile_context>
chip_gen: v5e
topology: v5e:2x2
jax: 0.10.0
libtpu: 0.0.40
codegen_flags: <defaults>
</compile_context>

<pallas_src>
import jax
import jax.numpy as jnp
import numpy as np
from jax.experimental import pallas as pl
from jax.experimental.pallas import tpu as pltpu

_EPS = 1e-5
_VMEM = pl.BlockSpec(memory_space=pltpu.MemorySpace.VMEM)


# ---------------------------------------------------------------------------
# Shared math (used verbatim by the Pallas kernels and the pure-JAX reference)
# ---------------------------------------------------------------------------
def _bn_relu(h, g, b):
    """BatchNorm2d (training-mode batch stats, biased var) + ReLU, affine fused.

    h: (C, R) f32 with channels on sublanes; g, b: (C, 1).  Wide-array work is
    h*h (for the lane-axis XLU reduces) and h*scale+shift + ReLU; everything
    else is per-channel (C, 1) scalars.  rsqrt goes to the EUP slot.
    """
    inv_r = 1.0 / h.shape[1]
    mean = jnp.sum(h, axis=1, keepdims=True) * inv_r
    ex2 = jnp.sum(h * h, axis=1, keepdims=True) * inv_r
    scale = g * jax.lax.rsqrt(ex2 - mean * mean + _EPS)
    shift = b - mean * scale
    return jnp.maximum(h * scale + shift, 0.0)


# ---------------------------------------------------------------------------
# Pallas kernels (whole small arrays resident in VMEM, no grid needed)
# ---------------------------------------------------------------------------
def _prelude_kernel(xl_ref, xg_ref, wl2l_ref, wg2l_ref, wl2g_ref, wc1_ref,
                    bn1_ref, outxl_ref, l2g_ref, x1_ref):
    # out_xl = convl2l(x_l) + convg2l(x_g); l2g = convl2g(x_l);
    # x1 = ReLU(BN(conv1(x_g)))  (SpectralTransform stage 1).
    xl = xl_ref[...]
    xg = xg_ref[...]
    outxl_ref[...] = (
        jnp.dot(wl2l_ref[...], xl, preferred_element_type=jnp.float32)
        + jnp.dot(wg2l_ref[...], xg, preferred_element_type=jnp.float32))
    l2g_ref[...] = jnp.dot(wl2g_ref[...], xl, preferred_element_type=jnp.float32)
    h = jnp.dot(wc1_ref[...], xg, preferred_element_type=jnp.float32)
    bn1 = bn1_ref[...]
    x1_ref[...] = _bn_relu(h, bn1[:, 0:1], bn1[:, 1:2])


def _fu_convs_kernel(fur_ref, fui_ref, fuw_ref, lfur_ref, lfui_ref, lfuw_ref,
                     bn_ref, fuor_ref, fuoi_ref, lfuor_ref, lfuoi_ref):
    # Both FourierUnit conv+BN+ReLU stages (global FU over (·,288), LFU over
    # (·,80)).  The real/imag channel concat is folded into the matmul and the
    # output chunk(2) is a cheap in-VMEM sublane slice.
    half = fur_ref.shape[0]
    bn = bn_ref[...]

    fuw = fuw_ref[...]
    h = (jnp.dot(fuw[:, :half], fur_ref[...], preferred_element_type=jnp.float32)
         + jnp.dot(fuw[:, half:], fui_ref[...], preferred_element_type=jnp.float32))
    y = _bn_relu(h, bn[:, 0:1], bn[:, 1:2])
    fuor_ref[...] = y[:half, :]
    fuoi_ref[...] = y[half:, :]

    lfuw = lfuw_ref[...]
    h2 = (jnp.dot(lfuw[:, :half], lfur_ref[...], preferred_element_type=jnp.float32)
          + jnp.dot(lfuw[:, half:], lfui_ref[...], preferred_element_type=jnp.float32))
    y2 = _bn_relu(h2, bn[:, 2:3], bn[:, 3:4])
    lfuor_ref[...] = y2[:half, :]
    lfuoi_ref[...] = y2[half:, :]


def _tail_kernel(x1_ref, fu_ref, xs_ref, l2g_ref, w2_ref, o_ref):
    # out_xg = conv2(x1 + fourier + lfu) + convl2g(x_l)
    s = x1_ref[...] + fu_ref[...] + xs_ref[...]
    o_ref[...] = (jnp.dot(w2_ref[...], s, preferred_element_type=jnp.float32)
                  + l2g_ref[...])


# ---------------------------------------------------------------------------
# Pallas op wrappers
# ---------------------------------------------------------------------------
def pallas_prelude(x_l, x_g, w_l2l, w_g2l, w_l2g, w_c1, bn1):
    out_cl, in_cl = w_l2l.shape
    in_cg = x_g.shape[0]
    out_cg = w_l2g.shape[0]
    half = w_c1.shape[0]
    r = x_l.shape[1]
    out_shape = (
        jax.ShapeDtypeStruct((out_cl, r), jnp.float32),   # out_xl
        jax.ShapeDtypeStruct((out_cg, r), jnp.float32),   # convl2g(x_l)
        jax.ShapeDtypeStruct((half, r), jnp.float32),     # x1
    )
    flops = 2 * r * (out_cl * in_cl + out_cl * in_cg + out_cg * in_cl
                     + half * in_cg) + 6 * half * r
    bytes_acc = 4 * (x_l.size + x_g.size + w_l2l.size + w_g2l.size + w_l2g.size
                     + w_c1.size + bn1.size + (out_cl + out_cg + half) * r)
    return pl.pallas_call(
        _prelude_kernel,
        out_shape=out_shape,
        in_specs=[_VMEM] * 7,
        out_specs=(_VMEM, _VMEM, _VMEM),
        cost_estimate=pl.CostEstimate(flops=int(flops), transcendentals=int(half),
                                      bytes_accessed=int(bytes_acc)),
    )(x_l, x_g, w_l2l, w_g2l, w_l2g, w_c1, bn1)


def pallas_fu_convs(fu_r, fu_i, fu_w, lfu_r, lfu_i, lfu_w, bn):
    half, rf = fu_r.shape
    rl = lfu_r.shape[1]
    c2 = fu_w.shape[0]                       # 2*half
    out_shape = (
        jax.ShapeDtypeStruct((half, rf), jnp.float32),    # FU real
        jax.ShapeDtypeStruct((half, rf), jnp.float32),    # FU imag
        jax.ShapeDtypeStruct((half, rl), jnp.float32),    # LFU real
        jax.ShapeDtypeStruct((half, rl), jnp.float32),    # LFU imag
    )
    flops = 2 * c2 * (2 * half) * (rf + rl) + 6 * c2 * (rf + rl)
    bytes_acc = 4 * (4 * half * (rf + rl) + fu_w.size + lfu_w.size + bn.size)
    return pl.pallas_call(
        _fu_convs_kernel,
        out_shape=out_shape,
        in_specs=[_VMEM] * 7,
        out_specs=(_VMEM,) * 4,
        cost_estimate=pl.CostEstimate(flops=int(flops), transcendentals=int(2 * c2),
                                      bytes_accessed=int(bytes_acc)),
    )(fu_r, fu_i, fu_w, lfu_r, lfu_i, lfu_w, bn)


def pallas_tail(x1, fu, xs, l2g, w2):
    out_cg, half = w2.shape
    r = x1.shape[1]
    flops = 2 * out_cg * half * r + 3 * half * r + out_cg * r
    bytes_acc = 4 * (3 * half * r + l2g.size + w2.size + out_cg * r)
    return pl.pallas_call(
        _tail_kernel,
        out_shape=jax.ShapeDtypeStruct((out_cg, r), jnp.float32),
        in_specs=[_VMEM] * 5,
        out_specs=_VMEM,
        cost_estimate=pl.CostEstimate(flops=int(flops), transcendentals=0,
                                      bytes_accessed=int(bytes_acc)),
    )(x1, fu, xs, l2g, w2)


PALLAS_OPS = dict(prelude=pallas_prelude, fu_convs=pallas_fu_convs, tail=pallas_tail)


# Pure-JAX reference ops (same math, highest-precision dots) for correctness.
def _ref_prelude(x_l, x_g, w_l2l, w_g2l, w_l2g, w_c1, bn1):
    out_xl = (jnp.dot(w_l2l, x_l, precision="highest")
              + jnp.dot(w_g2l, x_g, precision="highest"))
    l2g = jnp.dot(w_l2g, x_l, precision="highest")
    x1 = _bn_relu(jnp.dot(w_c1, x_g, precision="highest"), bn1[:, 0:1], bn1[:, 1:2])
    return out_xl, l2g, x1


def _ref_fu_convs(fu_r, fu_i, fu_w, lfu_r, lfu_i, lfu_w, bn):
    half = fu_r.shape[0]
    h = (jnp.dot(fu_w[:, :half], fu_r, precision="highest")
         + jnp.dot(fu_w[:, half:], fu_i, precision="highest"))
    y = _bn_relu(h, bn[:, 0:1], bn[:, 1:2])
    h2 = (jnp.dot(lfu_w[:, :half], lfu_r, precision="highest")
          + jnp.dot(lfu_w[:, half:], lfu_i, precision="highest"))
    y2 = _bn_relu(h2, bn[:, 2:3], bn[:, 3:4])
    return y[:half], y[half:], y2[:half], y2[half:]


def _ref_tail(x1, fu, xs, l2g, w2):
    return jnp.dot(w2, x1 + fu + xs, precision="highest") + l2g


REF_OPS = dict(prelude=_ref_prelude, fu_convs=_ref_fu_convs, tail=_ref_tail)


# ---------------------------------------------------------------------------
# Forward: channel-leading layout everywhere, FFTs on the last two axes.
# ---------------------------------------------------------------------------
def ffconv2d_forward(x_l, x_g, params, ops):
    # stride == 1 -> SpectralTransform.downsample is Identity; enable_lfu=True.
    n, in_cl, h, w = x_l.shape
    in_cg = x_g.shape[1]
    r = n * h * w

    # Single transpose per API input to channel-leading; all later (C, R)
    # views are free reshapes.
    xl_c = jnp.transpose(x_l, (1, 0, 2, 3)).reshape(in_cl, r)
    xg_c = jnp.transpose(x_g, (1, 0, 2, 3)).reshape(in_cg, r)

    g2g = params["g2g"]

    # --- stage 1 (1 pallas_call): all 1x1 convs that precede the FFTs -------
    out_xl_m, l2g_m, x1_m = ops["prelude"](
        xl_c, xg_c, params["w_l2l"], params["w_g2l"], params["w_l2g"],
        g2g["conv1_w"], g2g["bn1"])

    half = x1_m.shape[0]
    x1_c = x1_m.reshape(half, n, h, w)            # free reshape (channel-leading)

    # --- FFT glue (plain JAX; rfft2/irfft2 have no Pallas primitive) --------
    xf = jnp.fft.rfft2(x1_c, norm="ortho")        # (half, n, h, wr)
    wr = xf.shape[-1]
    rf = n * h * wr
    fu_r = jnp.real(xf).reshape(half, rf)
    fu_i = jnp.imag(xf).reshape(half, rf)

    split_no = 2                                  # LFU spatial shuffle
    xs = jnp.concatenate(jnp.split(x1_c[: half // 4], split_no, axis=2), axis=0)
    xs = jnp.concatenate(jnp.split(xs, split_no, axis=3), axis=0)  # (half, n, h/2, w/2)
    xsf = jnp.fft.rfft2(xs, norm="ortho")         # (half, n, h/2, lwr)
    lwr = xsf.shape[-1]
    rl = n * (h // split_no) * lwr
    lfu_r = jnp.real(xsf).reshape(half, rl)
    lfu_i = jnp.imag(xsf).reshape(half, rl)

    # --- stage 2 (1 pallas_call): both FourierUnit conv+BN+ReLU -------------
    fu_or, fu_oi, lfu_or, lfu_oi = ops["fu_convs"](
        fu_r, fu_i, g2g["fu_w"], lfu_r, lfu_i, g2g["lfu_w"], g2g["fu_lfu_bn"])

    fu = jnp.fft.irfft2(
        fu_or.reshape(half, n, h, wr) + 1j * fu_oi.reshape(half, n, h, wr),
        s=(h, w), norm="ortho")                                    # (half, n, h, w)
    lfu = jnp.fft.irfft2(
        lfu_or.reshape(half, n, h // split_no, lwr)
        + 1j * lfu_oi.reshape(half, n, h // split_no, lwr),
        s=(h // split_no, w // split_no), norm="ortho")            # (half, n, h/2, w/2)
    # TODO(synk): the 2x2 spatial repeat is only 32 KB here; fold it into the
    # tail kernel (quadrant grid / in-kernel broadcast) if H*W grows.
    lfu = jnp.tile(lfu, (1, 1, split_no, split_no))                # (half, n, h, w)

    # --- stage 3 (1 pallas_call): conv2 + residual adds + convl2g add -------
    out_xg_m = ops["tail"](x1_m, fu.reshape(half, r), lfu.reshape(half, r),
                           l2g_m, g2g["conv2_w"])

    out_cl = out_xl_m.shape[0]
    out_cg = out_xg_m.shape[0]
    out_xl = jnp.transpose(out_xl_m.reshape(out_cl, n, h, w), (1, 0, 2, 3))
    out_xg = jnp.transpose(out_xg_m.reshape(out_cg, n, h, w), (1, 0, 2, 3))
    return out_xl, out_xg


# ---------------------------------------------------------------------------
# Parameters
# ---------------------------------------------------------------------------
def init_params(key, in_channels=16, out_channels=16, ratio=(0.5, 0.5)):
    in_cl, in_cg = int(in_channels * ratio[0]), int(in_channels * ratio[1])
    out_cl, out_cg = int(out_channels * ratio[0]), int(out_channels * ratio[1])
    half = out_cg // 2
    ks = iter(jax.random.split(key, 16))

    def w(o, c):  # Conv2d(o, c, kernel_size=1, bias=False) weight, (out, in)
        return jax.random.normal(next(ks), (o, c), jnp.float32) * 0.1

    def bn(c):    # packed BN params, (C, 2): col 0 = gamma, col 1 = beta
        g = 1.0 + 0.1 * jax.random.normal(next(ks), (c, 1), jnp.float32)
        b = 0.1 * jax.random.normal(next(ks), (c, 1), jnp.float32)
        return jnp.concatenate([g, b], axis=1)

    fu_bn = bn(2 * half)
    lfu_bn = bn(2 * half)
    return dict(
        w_l2l=w(out_cl, in_cl),
        w_g2l=w(out_cl, in_cg),
        w_l2g=w(out_cg, in_cl),
        g2g=dict(
            conv1_w=w(half, in_cg), bn1=bn(half),
            fu_w=w(2 * half, 2 * half), lfu_w=w(2 * half, 2 * half),
            fu_lfu_bn=jnp.concatenate([fu_bn, lfu_bn], axis=1),   # (2*half, 4)
            conv2_w=w(out_cg, half),
        ),
    )


if __name__ == "__main__":
    key = jax.random.PRNGKey(0)
    k_p, k_l, k_g = jax.random.split(key, 3)
    params = init_params(k_p)
    # FFConv2d input is the tuple (x_l, x_g): local and global channel halves.
    x_l = jax.random.normal(k_l, (2, 8, 16, 16), jnp.float32)
    x_g = jax.random.normal(k_g, (2, 8, 16, 16), jnp.float32)

    pallas_fwd = jax.jit(lambda xl, xg, p: ffconv2d_forward(xl, xg, p, PALLAS_OPS))
    out_xl, out_xg = pallas_fwd(x_l, x_g, params)
    out_xl = jax.block_until_ready(out_xl)
    out_xg = jax.block_until_ready(out_xg)
    assert out_xl.shape == (2, 8, 16, 16) and out_xg.shape == (2, 8, 16, 16)

    # Cross-check against a pure-JAX reference of the same math.
    ref_xl, ref_xg = ffconv2d_forward(x_l, x_g, params, REF_OPS)
    np.testing.assert_allclose(np.asarray(out_xl), np.asarray(ref_xl), rtol=5e-4, atol=5e-4)
    np.testing.assert_allclose(np.asarray(out_xg), np.asarray(ref_xg), rtol=5e-4, atol=5e-4)

    print("KERNEL_OK")
</pallas_src>

<mosaic_0001>
module attributes {stable_mosaic.version = 11 : i64} {
  func.func @_prelude_kernel(%arg0: memref<8x512xf32, #tpu.memory_space<vmem>>, %arg1: memref<8x512xf32, #tpu.memory_space<vmem>>, %arg2: memref<8x8xf32, #tpu.memory_space<vmem>>, %arg3: memref<8x8xf32, #tpu.memory_space<vmem>>, %arg4: memref<8x8xf32, #tpu.memory_space<vmem>>, %arg5: memref<4x8xf32, #tpu.memory_space<vmem>>, %arg6: memref<4x2xf32, #tpu.memory_space<vmem>>, %arg7: memref<8x512xf32, #tpu.memory_space<vmem>>, %arg8: memref<8x512xf32, #tpu.memory_space<vmem>>, %arg9: memref<4x512xf32, #tpu.memory_space<vmem>>) attributes {dimension_semantics = [], scalar_prefetch = 0 : i64, scratch_operands = 0 : i64, tpu.core_type = #tpu.core_type<tc>} {
    %c0 = arith.constant 0 : index
    %c0_0 = arith.constant 0 : index
    %0 = vector.load %arg0[%c0, %c0_0] : memref<8x512xf32, #tpu.memory_space<vmem>>, vector<8x512xf32>
    %c0_1 = arith.constant 0 : index
    %c0_2 = arith.constant 0 : index
    %1 = vector.load %arg1[%c0_1, %c0_2] : memref<8x512xf32, #tpu.memory_space<vmem>>, vector<8x512xf32>
    %c0_3 = arith.constant 0 : index
    %c0_4 = arith.constant 0 : index
    %2 = vector.load %arg2[%c0_3, %c0_4] : memref<8x8xf32, #tpu.memory_space<vmem>>, vector<8x8xf32>
    %cst = arith.constant dense<0.000000e+00> : vector<8x512xf32>
    %3 = tpu.matmul %2, %0, %cst {dimension_numbers = #tpu.dot_dimension_numbers<[1], [0], [0], [1], [0, 0, 1, 1], [], []>} : vector<8x8xf32>, vector<8x512xf32>, vector<8x512xf32> -> vector<8x512xf32>
    %c0_5 = arith.constant 0 : index
    %c0_6 = arith.constant 0 : index
    %4 = vector.load %arg3[%c0_5, %c0_6] : memref<8x8xf32, #tpu.memory_space<vmem>>, vector<8x8xf32>
    %cst_7 = arith.constant dense<0.000000e+00> : vector<8x512xf32>
    %5 = tpu.matmul %4, %1, %cst_7 {dimension_numbers = #tpu.dot_dimension_numbers<[1], [0], [0], [1], [0, 0, 1, 1], [], []>} : vector<8x8xf32>, vector<8x512xf32>, vector<8x512xf32> -> vector<8x512xf32>
    %6 = arith.addf %3, %5 : vector<8x512xf32>
    %c0_8 = arith.constant 0 : index
    %c0_9 = arith.constant 0 : index
    %7 = vector.load %arg7[%c0_8, %c0_9] : memref<8x512xf32, #tpu.memory_space<vmem>>, vector<8x512xf32>
    tpu.vector_store %arg7[%c0_8, %c0_9], %6 {strides = array<i32>} : memref<8x512xf32, #tpu.memory_space<vmem>>, vector<8x512xf32>,
    %c0_10 = arith.constant 0 : index
    %c0_11 = arith.constant 0 : index
    %8 = vector.load %arg4[%c0_10, %c0_11] : memref<8x8xf32, #tpu.memory_space<vmem>>, vector<8x8xf32>
    %cst_12 = arith.constant dense<0.000000e+00> : vector<8x512xf32>
    %9 = tpu.matmul %8, %0, %cst_12 {dimension_numbers = #tpu.dot_dimension_numbers<[1], [0], [0], [1], [0, 0, 1, 1], [], []>} : vector<8x8xf32>, vector<8x512xf32>, vector<8x512xf32> -> vector<8x512xf32>
    %c0_13 = arith.constant 0 : index
    %c0_14 = arith.constant 0 : index
    %10 = vector.load %arg8[%c0_13, %c0_14] : memref<8x512xf32, #tpu.memory_space<vmem>>, vector<8x512xf32>
    tpu.vector_store %arg8[%c0_13, %c0_14], %9 {strides = array<i32>} : memref<8x512xf32, #tpu.memory_space<vmem>>, vector<8x512xf32>,
    %c0_15 = arith.constant 0 : index
    %c0_16 = arith.constant 0 : index
    %11 = vector.load %arg5[%c0_15, %c0_16] : memref<4x8xf32, #tpu.memory_space<vmem>>, vector<4x8xf32>
    %cst_17 = arith.constant dense<0.000000e+00> : vector<4x512xf32>
    %12 = tpu.matmul %11, %1, %cst_17 {dimension_numbers = #tpu.dot_dimension_numbers<[1], [0], [0], [1], [0, 0, 1, 1], [], []>} : vector<4x8xf32>, vector<8x512xf32>, vector<4x512xf32> -> vector<4x512xf32>
    %c0_18 = arith.constant 0 : index
    %c0_19 = arith.constant 0 : index
    %13 = vector.load %arg6[%c0_18, %c0_19] : memref<4x2xf32, #tpu.memory_space<vmem>>, vector<4x2xf32>
    %14 = vector.extract_strided_slice %13 {offsets = [0, 0], sizes = [4, 1], strides = [1, 1]} : vector<4x2xf32> to vector<4x1xf32>
    %15 = vector.extract_strided_slice %13 {offsets = [0, 1], sizes = [4, 1], strides = [1, 1]} : vector<4x2xf32> to vector<4x1xf32>
    %cst_20 = arith.constant dense<0.000000e+00> : vector<4xf32>
    %16 = vector.multi_reduction <add>, %12, %cst_20 [1] : vector<4x512xf32> to vector<4xf32>
    %17 = vector.shape_cast %16 : vector<4xf32> to vector<4x1xf32>
    %cst_21 = arith.constant 0.001953125 : f32
    %18 = vector.broadcast %cst_21 : f32 to vector<4x1xf32>
    %19 = arith.mulf %17, %18 : vector<4x1xf32>
    %20 = arith.mulf %12, %12 : vector<4x512xf32>
    %cst_22 = arith.constant dense<0.000000e+00> : vector<4xf32>
    %21 = vector.multi_reduction <add>, %20, %cst_22 [1] : vector<4x512xf32> to vector<4xf32>
    %22 = vector.shape_cast %21 : vector<4xf32> to vector<4x1xf32>
    %cst_23 = arith.constant 0.001953125 : f32
    %23 = vector.broadcast %cst_23 : f32 to vector<4x1xf32>
    %24 = arith.mulf %22, %23 : vector<4x1xf32>
    %25 = arith.mulf %19, %19 : vector<4x1xf32>
    %26 = arith.subf %24, %25 : vector<4x1xf32>
    %cst_24 = arith.constant 9.99999974E-6 : f32
    %27 = vector.broadcast %cst_24 : f32 to vector<4x1xf32>
    %28 = arith.addf %26, %27 : vector<4x1xf32>
    %29 = math.rsqrt %28 : vector<4x1xf32>
    %30 = arith.mulf %14, %29 : vector<4x1xf32>
    %31 = arith.mulf %19, %30 : vector<4x1xf32>
    %32 = arith.subf %15, %31 : vector<4x1xf32>
    %33 = vector.broadcast %30 : vector<4x1xf32> to vector<4x512xf32>
    %34 = arith.mulf %12, %33 : vector<4x512xf32>
    %35 = vector.broadcast %32 : vector<4x1xf32> to vector<4x512xf32>
    %36 = arith.addf %34, %35 : vector<4x512xf32>
    %cst_25 = arith.constant 0.000000e+00 : f32
    %37 = vector.broadcast %cst_25 : f32 to vector<4x512xf32>
    %38 = arith.maximumf %36, %37 : vector<4x512xf32>
    %c0_26 = arith.constant 0 : index
    %c0_27 = arith.constant 0 : index
    %39 = vector.load %arg9[%c0_26, %c0_27] : memref<4x512xf32, #tpu.memory_space<vmem>>, vector<4x512xf32>
    tpu.vector_store %arg9[%c0_26, %c0_27], %38 {strides = array<i32>} : memref<4x512xf32, #tpu.memory_space<vmem>>, vector<4x512xf32>,
    return
  }
}

module attributes {stable_mosaic.version = 11 : i64} {
  func.func @_fu_convs_kernel(%arg0: memref<4x288xf32, #tpu.memory_space<vmem>>, %arg1: memref<4x288xf32, #tpu.memory_space<vmem>>, %arg2: memref<8x8xf32, #tpu.memory_space<vmem>>, %arg3: memref<4x80xf32, #tpu.memory_space<vmem>>, %arg4: memref<4x80xf32, #tpu.memory_space<vmem>>, %arg5: memref<8x8xf32, #tpu.memory_space<vmem>>, %arg6: memref<8x4xf32, #tpu.memory_space<vmem>>, %arg7: memref<4x288xf32, #tpu.memory_space<vmem>>, %arg8: memref<4x288xf32, #tpu.memory_space<vmem>>, %arg9: memref<4x80xf32, #tpu.memory_space<vmem>>, %arg10: memref<4x80xf32, #tpu.memory_space<vmem>>) attributes {dimension_semantics = [], scalar_prefetch = 0 : i64, scratch_operands = 0 : i64, tpu.core_type = #tpu.core_type<tc>} {
    %c0 = arith.constant 0 : index
    %c0_0 = arith.constant 0 : index
    %0 = vector.load %arg6[%c0, %c0_0] : memref<8x4xf32, #tpu.memory_space<vmem>>, vector<8x4xf32>
    %c0_1 = arith.constant 0 : index
    %c0_2 = arith.constant 0 : index
    %1 = vector.load %arg2[%c0_1, %c0_2] : memref<8x8xf32, #tpu.memory_space<vmem>>, vector<8x8xf32>
    %2 = vector.extract_strided_slice %1 {offsets = [0, 0], sizes = [8, 4], strides = [1, 1]} : vector<8x8xf32> to vector<8x4xf32>
    %c0_3 = arith.constant 0 : index
    %c0_4 = arith.constant 0 : index
    %3 = vector.load %arg0[%c0_3, %c0_4] : memref<4x288xf32, #tpu.memory_space<vmem>>, vector<4x288xf32>
    %cst = arith.constant dense<0.000000e+00> : vector<8x288xf32>
    %4 = tpu.matmul %2, %3, %cst {dimension_numbers = #tpu.dot_dimension_numbers<[1], [0], [0], [1], [0, 0, 1, 1], [], []>} : vector<8x4xf32>, vector<4x288xf32>, vector<8x288xf32> -> vector<8x288xf32>
    %5 = vector.extract_strided_slice %1 {offsets = [0, 4], sizes = [8, 4], strides = [1, 1]} : vector<8x8xf32> to vector<8x4xf32>
    %c0_5 = arith.constant 0 : index
    %c0_6 = arith.constant 0 : index
    %6 = vector.load %arg1[%c0_5, %c0_6] : memref<4x288xf32, #tpu.memory_space<vmem>>, vector<4x288xf32>
    %cst_7 = arith.constant dense<0.000000e+00> : vector<8x288xf32>
    %7 = tpu.matmul %5, %6, %cst_7 {dimension_numbers = #tpu.dot_dimension_numbers<[1], [0], [0], [1], [0, 0, 1, 1], [], []>} : vector<8x4xf32>, vector<4x288xf32>, vector<8x288xf32> -> vector<8x288xf32>
    %8 = arith.addf %4, %7 : vector<8x288xf32>
    %9 = vector.extract_strided_slice %0 {offsets = [0, 0], sizes = [8, 1], strides = [1, 1]} : vector<8x4xf32> to vector<8x1xf32>
    %10 = vector.extract_strided_slice %0 {offsets = [0, 1], sizes = [8, 1], strides = [1, 1]} : vector<8x4xf32> to vector<8x1xf32>
    %cst_8 = arith.constant dense<0.000000e+00> : vector<8xf32>
    %11 = vector.multi_reduction <add>, %8, %cst_8 [1] : vector<8x288xf32> to vector<8xf32>
    %12 = vector.shape_cast %11 : vector<8xf32> to vector<8x1xf32>
    %cst_9 = arith.constant 0.00347222225 : f32
    %13 = vector.broadcast %cst_9 : f32 to vector<8x1xf32>
    %14 = arith.mulf %12, %13 : vector<8x1xf32>
    %15 = arith.mulf %8, %8 : vector<8x288xf32>
    %cst_10 = arith.constant dense<0.000000e+00> : vector<8xf32>
    %16 = vector.multi_reduction <add>, %15, %cst_10 [1] : vector<8x288xf32> to vector<8xf32>
    %17 = vector.shape_cast %16 : vector<8xf32> to vector<8x1xf32>
    %cst_11 = arith.constant 0.00347222225 : f32
    %18 = vector.broadcast %cst_11 : f32 to vector<8x1xf32>
    %19 = arith.mulf %17, %18 : vector<8x1xf32>
    %20 = arith.mulf %14, %14 : vector<8x1xf32>
    %21 = arith.subf %19, %20 : vector<8x1xf32>
    %cst_12 = arith.constant 9.99999974E-6 : f32
    %22 = vector.broadcast %cst_12 : f32 to vector<8x1xf32>
    %23 = arith.addf %21, %22 : vector<8x1xf32>
    %24 = math.rsqrt %23 : vector<8x1xf32>
    %25 = arith.mulf %9, %24 : vector<8x1xf32>
    %26 = arith.mulf %14, %25 : vector<8x1xf32>
    %27 = arith.subf %10, %26 : vector<8x1xf32>
    %28 = vector.broadcast %25 : vector<8x1xf32> to vector<8x288xf32>
    %29 = arith.mulf %8, %28 : vector<8x288xf32>
    %30 = vector.broadcast %27 : vector<8x1xf32> to vector<8x288xf32>
    %31 = arith.addf %29, %30 : vector<8x288xf32>
    %cst_13 = arith.constant 0.000000e+00 : f32
    %32 = vector.broadcast %cst_13 : f32 to vector<8x288xf32>
    %33 = arith.maximumf %31, %32 : vector<8x288xf32>
    %34 = vector.extract_strided_slice %33 {offsets = [0, 0], sizes = [4, 288], strides = [1, 1]} : vector<8x288xf32> to vector<4x288xf32>
    %c0_14 = arith.constant 0 : index
    %c0_15 = arith.constant 0 : index
    %35 = vector.load %arg7[%c0_14, %c0_15] : memref<4x288xf32, #tpu.memory_space<vmem>>, vector<4x288xf32>
    tpu.vector_store %arg7[%c0_14, %c0_15], %34 {strides = array<i32>} : memref<4x288xf32, #tpu.memory_space<vmem>>, vector<4x288xf32>,
    %36 = vector.extract_strided_slice %33 {offsets = [4, 0], sizes = [4, 288], strides = [1, 1]} : vector<8x288xf32> to vector<4x288xf32>
    %c0_16 = arith.constant 0 : index
    %c0_17 = arith.constant 0 : index
    %37 = vector.load %arg8[%c0_16, %c0_17] : memref<4x288xf32, #tpu.memory_space<vmem>>, vector<4x288xf32>
    tpu.vector_store %arg8[%c0_16, %c0_17], %36 {strides = array<i32>} : memref<4x288xf32, #tpu.memory_space<vmem>>, vector<4x288xf32>,
    %c0_18 = arith.constant 0 : index
    %c0_19 = arith.constant 0 : index
    %38 = vector.load %arg5[%c0_18, %c0_19] : memref<8x8xf32, #tpu.memory_space<vmem>>, vector<8x8xf32>
    %39 = vector.extract_strided_slice %38 {offsets = [0, 0], sizes = [8, 4], strides = [1, 1]} : vector<8x8xf32> to vector<8x4xf32>
    %c0_20 = arith.constant 0 : index
    %c0_21 = arith.constant 0 : index
    %40 = vector.load %arg3[%c0_20, %c0_21] : memref<4x80xf32, #tpu.memory_space<vmem>>, vector<4x80xf32>
    %cst_22 = arith.constant dense<0.000000e+00> : vector<8x80xf32>
    %41 = tpu.matmul %39, %40, %cst_22 {dimension_numbers = #tpu.dot_dimension_numbers<[1], [0], [0], [1], [0, 0, 1, 1], [], []>} : vector<8x4xf32>, vector<4x80xf32>, vector<8x80xf32> -> vector<8x80xf32>
    %42 = vector.extract_strided_slice %38 {offsets = [0, 4], sizes = [8, 4], strides = [1, 1]} : vector<8x8xf32> to vector<8x4xf32>
    %c0_23 = arith.constant 0 : index
    %c0_24 = arith.constant 0 : index
    %43 = vector.load %arg4[%c0_23, %c0_24] : memref<4x80xf32, #tpu.memory_space<vmem>>, vector<4x80xf32>
    %cst_25 = arith.constant dense<0.000000e+00> : vector<8x80xf32>
    %44 = tpu.matmul %42, %43, %cst_25 {dimension_numbers = #tpu.dot_dimension_numbers<[1], [0], [0], [1], [0, 0, 1, 1], [], []>} : vector<8x4xf32>, vector<4x80xf32>, vector<8x80xf32> -> vector<8x80xf32>
    %45 = arith.addf %41, %44 : vector<8x80xf32>
    %46 = vector.extract_strided_slice %0 {offsets = [0, 2], sizes = [8, 1], strides = [1, 1]} : vector<8x4xf32> to vector<8x1xf32>
    %47 = vector.extract_strided_slice %0 {offsets = [0, 3], sizes = [8, 1], strides = [1, 1]} : vector<8x4xf32> to vector<8x1xf32>
    %cst_26 = arith.constant dense<0.000000e+00> : vector<8xf32>
    %48 = vector.multi_reduction <add>, %45, %cst_26 [1] : vector<8x80xf32> to vector<8xf32>
    %49 = vector.shape_cast %48 : vector<8xf32> to vector<8x1xf32>
    %cst_27 = arith.constant 1.250000e-02 : f32
    %50 = vector.broadcast %cst_27 : f32 to vector<8x1xf32>
    %51 = arith.mulf %49, %50 : vector<8x1xf32>
    %52 = arith.mulf %45, %45 : vector<8x80xf32>
    %cst_28 = arith.constant dense<0.000000e+00> : vector<8xf32>
    %53 = vector.multi_reduction <add>, %52, %cst_28 [1] : vector<8x80xf32> to vector<8xf32>
    %54 = vector.shape_cast %53 : vector<8xf32> to vector<8x1xf32>
    %cst_29 = arith.constant 1.250000e-02 : f32
    %55 = vector.broadcast %cst_29 : f32 to vector<8x1xf32>
    %56 = arith.mulf %54, %55 : vector<8x1xf32>
    %57 = arith.mulf %51, %51 : vector<8x1xf32>
    %58 = arith.subf %56, %57 : vector<8x1xf32>
    %cst_30 = arith.constant 9.99999974E-6 : f32
    %59 = vector.broadcast %cst_30 : f32 to vector<8x1xf32>
    %60 = arith.addf %58, %59 : vector<8x1xf32>
    %61 = math.rsqrt %60 : vector<8x1xf32>
    %62 = arith.mulf %46, %61 : vector<8x1xf32>
    %63 = arith.mulf %51, %62 : vector<8x1xf32>
    %64 = arith.subf %47, %63 : vector<8x1xf32>
    %65 = vector.broadcast %62 : vector<8x1xf32> to vector<8x80xf32>
    %66 = arith.mulf %45, %65 : vector<8x80xf32>
    %67 = vector.broadcast %64 : vector<8x1xf32> to vector<8x80xf32>
    %68 = arith.addf %66, %67 : vector<8x80xf32>
    %cst_31 = arith.constant 0.000000e+00 : f32
    %69 = vector.broadcast %cst_31 : f32 to vector<8x80xf32>
    %70 = arith.maximumf %68, %69 : vector<8x80xf32>
    %71 = vector.extract_strided_slice %70 {offsets = [0, 0], sizes = [4, 80], strides = [1, 1]} : vector<8x80xf32> to vector<4x80xf32>
    %c0_32 = arith.constant 0 : index
    %c0_33 = arith.constant 0 : index
    %72 = vector.load %arg9[%c0_32, %c0_33] : memref<4x80xf32, #tpu.memory_space<vmem>>, vector<4x80xf32>
    tpu.vector_store %arg9[%c0_32, %c0_33], %71 {strides = array<i32>} : memref<4x80xf32, #tpu.memory_space<vmem>>, vector<4x80xf32>,
    %73 = vector.extract_strided_slice %70 {offsets = [4, 0], sizes = [4, 80], strides = [1, 1]} : vector<8x80xf32> to vector<4x80xf32>
    %c0_34 = arith.constant 0 : index
    %c0_35 = arith.constant 0 : index
    %74 = vector.load %arg10[%c0_34, %c0_35] : memref<4x80xf32, #tpu.memory_space<vmem>>, vector<4x80xf32>
    tpu.vector_store %arg10[%c0_34, %c0_35], %73 {strides = array<i32>} : memref<4x80xf32, #tpu.memory_space<vmem>>, vector<4x80xf32>,
    return
  }
}

module attributes {stable_mosaic.version = 11 : i64} {
  func.func @_tail_kernel(%arg0: memref<4x512xf32, #tpu.memory_space<vmem>>, %arg1: memref<4x512xf32, #tpu.memory_space<vmem>>, %arg2: memref<4x512xf32, #tpu.memory_space<vmem>>, %arg3: memref<8x512xf32, #tpu.memory_space<vmem>>, %arg4: memref<8x4xf32, #tpu.memory_space<vmem>>, %arg5: memref<8x512xf32, #tpu.memory_space<vmem>>) attributes {dimension_semantics = [], scalar_prefetch = 0 : i64, scratch_operands = 0 : i64, tpu.core_type = #tpu.core_type<tc>} {
    %c0 = arith.constant 0 : index
    %c0_0 = arith.constant 0 : index
    %0 = vector.load %arg0[%c0, %c0_0] : memref<4x512xf32, #tpu.memory_space<vmem>>, vector<4x512xf32>
    %c0_1 = arith.constant 0 : index
    %c0_2 = arith.constant 0 : index
    %1 = vector.load %arg1[%c0_1, %c0_2] : memref<4x512xf32, #tpu.memory_space<vmem>>, vector<4x512xf32>
    %2 = arith.addf %0, %1 : vector<4x512xf32>
    %c0_3 = arith.constant 0 : index
    %c0_4 = arith.constant 0 : index
    %3 = vector.load %arg2[%c0_3, %c0_4] : memref<4x512xf32, #tpu.memory_space<vmem>>, vector<4x512xf32>
    %4 = arith.addf %2, %3 : vector<4x512xf32>
    %c0_5 = arith.constant 0 : index
    %c0_6 = arith.constant 0 : index
    %5 = vector.load %arg4[%c0_5, %c0_6] : memref<8x4xf32, #tpu.memory_space<vmem>>, vector<8x4xf32>
    %cst = arith.constant dense<0.000000e+00> : vector<8x512xf32>
    %6 = tpu.matmul %5, %4, %cst {dimension_numbers = #tpu.dot_dimension_numbers<[1], [0], [0], [1], [0, 0, 1, 1], [], []>} : vector<8x4xf32>, vector<4x512xf32>, vector<8x512xf32> -> vector<8x512xf32>
    %c0_7 = arith.constant 0 : index
    %c0_8 = arith.constant 0 : index
    %7 = vector.load %arg3[%c0_7, %c0_8] : memref<8x512xf32, #tpu.memory_space<vmem>>, vector<8x512xf32>
    %8 = arith.addf %6, %7 : vector<8x512xf32>
    %c0_9 = arith.constant 0 : index
    %c0_10 = arith.constant 0 : index
    %9 = vector.load %arg5[%c0_9, %c0_10] : memref<8x512xf32, #tpu.memory_space<vmem>>, vector<8x512xf32>
    tpu.vector_store %arg5[%c0_9, %c0_10], %8 {strides = array<i32>} : memref<8x512xf32, #tpu.memory_space<vmem>>, vector<8x512xf32>,
    return
  }
}

</mosaic_0001>

<bundles_post_ra>
// kernel: _lambda_.3
= control target key start
LH: loop header
LB: loop body
LE: loop exit
PB: predicated region body
PF: predicated region fallthrough
CT: control target
= control target key end

     0   :  { %vm39_vm0 = vcmask 64512   ;;  %vm383_vm1 = vcmask 1043456   ;;  %v498_v52 = vmov 0   ;;  %s499_s22 = smov 1   ;;  %s646_s1 = inlined_call_operand.vmem [shape: f32[8,512], index: 1, kind: input, shape index: {}]   ;;  %s647_s3 = inlined_call_operand.vmem [shape: f32[8,8], index: 3, kind: input, shape index: {}]   ;;  %s648_s0 = inlined_call_operand.vmem [shape: f32[8,512], index: 0, kind: input, shape index: {}]   ;;  %s649_s2 = inlined_call_operand.vmem [shape: f32[8,8], index: 2, kind: input, shape index: {}]   ;;  %s650_s4 = inlined_call_operand.vmem [shape: f32[8,8], index: 4, kind: input, shape index: {}]   ;;  %s651_s5 = inlined_call_operand.vmem [shape: f32[4,8], index: 5, kind: input, shape index: {}]   ;;  %s652_s7 = inlined_call_operand.vmem [shape: f32[8,512], index: 7, kind: output, shape index: {0}]   ;;  %s653_s8 = inlined_call_operand.vmem [shape: f32[8,512], index: 8, kind: output, shape index: {1}]   ;;  %s654_s6 = inlined_call_operand.vmem [shape: f32[4,2], index: 6, kind: input, shape index: {}]   ;;  %s655_s9 = inlined_call_operand.vmem [shape: f32[4,512], index: 9, kind: output, shape index: {2}]  }
   0x1   :  { %v33_v0 = vld [vmem:[%s646_s1] sm:$0xff]  ;;  %v34_v1 = vld [vmem:[%s646_s1 + $0x8] sm:$0xff]  ;;  %v35_v2 = vld [vmem:[%s646_s1 + $0x10] sm:$0xff]  ;;  %493 = vset.pattern.permute.xlu1 %v498_v52 }
   0x2   :  { %58 = vmatpush.msra.mxu0 %v33_v0  ;;  %78 = vmatpush.msra.mxu1 %v34_v1  ;;  %v36_v3 = vld [vmem:[%s646_s1 + $0x18] sm:$0xff]  ;;  %v38_v4 = vld [vmem:[%s647_s3] sm:$0xff]  ;;  %v31_v5 = vld [vmem:[%s648_s0 + $0x10] sm:$0xff] }
   0x3   :  { %98 = vmatpush.msra.mxu2 %v35_v2  ;;  %118 = vmatpush.msra.mxu3 %v36_v3  ;;  %v32_v6 = vld [vmem:[%s648_s0 + $0x18] sm:$0xff]  ;;  %v29_v7 = vld [vmem:[%s648_s0] sm:$0xff]  ;;  %v30_v8 = vld [vmem:[%s648_s0 + $0x8] sm:$0xff] }
   0x4   :  { %474 = vmatmul.msk.f32.vlgmr.msra.gmra.mxu0 %vm39_vm0, %v38_v4  ;;  %475 = vmatmul.msk.f32.vlgmr.msra.gmra.mxu1 %vm39_vm0, %v38_v4  ;;  %v37_v9 = vld [vmem:[%s649_s2] sm:$0xff] }
   0x5   :  { %476 = vmatmul.msk.f32.vlgmr.msra.gmra.mxu2 %vm39_vm0, %v38_v4  ;;  %477 = vmatmul.msk.f32.vlgmr.msra.gmra.mxu3 %vm39_vm0, %v38_v4  ;;  %v210_v10 = vld [vmem:[%s650_s4] sm:$0xff]  ;;  %v500_v4 = vmov 1  }
   0x6   :  { %181 = vmatpush.msrb.mxu2 %v31_v5  ;;  %201 = vmatpush.msrb.mxu3 %v32_v6  ;;  %v298_v11 = vld [vmem:[%s651_s5] sm:$0xf] }
   0x7   :  { %141 = vmatpush.msrb.mxu0 %v29_v7  ;;  %161 = vmatpush.msrb.mxu1 %v30_v8  ;;  %v382_v63 = vld [vmem:[%s654_s6] sm:$0xf] }
   0x8   :  { %269 = vmatpush.msra.mxu2 %v31_v5  ;;  %289 = vmatpush.msra.mxu3 %v32_v6 }
   0x9   :  { %229 = vmatpush.msra.mxu0 %v29_v7  ;;  %249 = vmatpush.msra.mxu1 %v30_v8 }
   0xa   :  { %494 = vset.pattern.permute.xlu2 %v500_v4  ;;  %495 = vset.pattern.permute.xlu0 %v500_v4 }
   0xc   :  { %478 = vmatmul.msk.f32.vlgmr.msrb.gmra.mxu0 %vm39_vm0, %v37_v9  ;;  %479 = vmatmul.msk.f32.vlgmr.msrb.gmra.mxu1 %vm39_vm0, %v37_v9 }
   0xd   :  { %480 = vmatmul.msk.f32.vlgmr.msrb.gmra.mxu2 %vm39_vm0, %v37_v9  ;;  %481 = vmatmul.msk.f32.vlgmr.msrb.gmra.mxu3 %vm39_vm0, %v37_v9 }
   0xe   :  { %357 = vmatpush.msrb.mxu2 %v35_v2  ;;  %377 = vmatpush.msrb.mxu3 %v36_v3 }
   0xf   :  { %317 = vmatpush.msrb.mxu0 %v33_v0  ;;  %337 = vmatpush.msrb.mxu1 %v34_v1 }
  0x14   :  { %482 = vmatmul.msk.f32.vlgmr.msra.gmra.mxu0 %vm39_vm0, %v210_v10  ;;  %483 = vmatmul.msk.f32.vlgmr.msra.gmra.mxu1 %vm39_vm0, %v210_v10 }
  0x15   :  { %484 = vmatmul.msk.f32.vlgmr.msra.gmra.mxu2 %vm39_vm0, %v210_v10  ;;  %485 = vmatmul.msk.f32.vlgmr.msra.gmra.mxu3 %vm39_vm0, %v210_v10 }
  0x1c   :  { %486 = vmatmul.msk.f32.vlgmr.msrb.gmra.mxu0 %vm39_vm0, %v298_v11  ;;  %487 = vmatmul.msk.f32.vlgmr.msrb.gmra.mxu1 %vm39_vm0, %v298_v11 }
  0x1d   :  { %488 = vmatmul.msk.f32.vlgmr.msrb.gmra.mxu2 %vm39_vm0, %v298_v11  ;;  %489 = vmatmul.msk.f32.vlgmr.msrb.gmra.mxu3 %vm39_vm0, %v298_v11 }
  0x81   :  { %v60_v12 = vpop.f32.mrf.mxu0  ;;  %v80_v13 = vpop.f32.mrf.mxu1 }
  0x88   :  { %v100_v14 = vpop.f32.mrf.mxu2  ;;  %v120_v15 = vpop.f32.mrf.mxu3 }
  0x89   :  { %v143_v16 = vpop.f32.mrf.mxu0  ;;  %v163_v17 = vpop.f32.mrf.mxu1 }
  0x8a   :  { %v144_v18 = vadd.f32 %v143_v16, %v60_v12  ;;  %v164_v19 = vadd.f32 %v163_v17, %v80_v13 }
  0x8c   :  { %206 = vst [vmem:[%s652_s7] sm:$0xff] %v144_v18 }
  0x8d   :  { %207 = vst [vmem:[%s652_s7 + $0x8] sm:$0xff] %v164_v19 }
  0x90   :  { %v183_v20 = vpop.f32.mrf.mxu2  ;;  %v203_v21 = vpop.f32.mrf.mxu3 }
  0x91   :  { %v184_v22 = vadd.f32 %v183_v20, %v100_v14  ;;  %v204_v23 = vadd.f32 %v203_v21, %v120_v15  ;;  %v231_v24 = vpop.f32.mrf.mxu0  ;;  %v251_v25 = vpop.f32.mrf.mxu1 }
  0x92   :  { %294 = vst [vmem:[%s653_s8] sm:$0xff] %v231_v24 }
  0x93   :  { %208 = vst [vmem:[%s652_s7 + $0x10] sm:$0xff] %v184_v22 }
  0x94   :  { %209 = vst [vmem:[%s652_s7 + $0x18] sm:$0xff] %v204_v23 }
  0x95   :  { %295 = vst [vmem:[%s653_s8 + $0x8] sm:$0xff] %v251_v25 }
  0x98   :  { %v271_v26 = vpop.f32.mrf.mxu2  ;;  %v291_v27 = vpop.f32.mrf.mxu3 }
  0x99   :  { %296 = vst [vmem:[%s653_s8 + $0x10] sm:$0xff] %v271_v26  ;;  %v319_v28 = vpop.f32.mrf.mxu0  ;;  %v339_v29 = vpop.f32.mrf.mxu1 }
  0x9a   :  { %297 = vst [vmem:[%s653_s8 + $0x18] sm:$0xff] %v291_v27  ;;  %v384_v30 = vsel %vm383_vm1, %v319_v28, 0.0  ;;  %v385_v31 = vsel %vm383_vm1, %v339_v29, 0.0  ;;  %v394_v32 = vmul.f32 %v319_v28, %v319_v28  ;;  %v395_v33 = vmul.f32 %v339_v29, %v339_v29 }
  0x9b   :  { %v386_v34 = vadd.f32 %v385_v31, %v384_v30 }
  0x9c   :  { %v398_v35 = vsel %vm383_vm1, %v394_v32, 0.0  ;;  %v399_v38 = vsel %vm383_vm1, %v395_v33, 0.0 }
  0x9d   :  { %v400_v43 = vadd.f32 %v399_v38, %v398_v35 }
  0xa0   :  { %v359_v36 = vpop.f32.mrf.mxu2  ;;  %v379_v37 = vpop.f32.mrf.mxu3 }
  0xa1   :  { %v387_v39 = vsel %vm383_vm1, %v359_v36, 0.0  ;;  %v396_v40 = vmul.f32 %v359_v36, %v359_v36  ;;  %v389_v41 = vsel %vm383_vm1, %v379_v37, 0.0  ;;  %v397_v46 = vmul.f32 %v379_v37, %v379_v37 }
  0xa2   :  { %v388_v42 = vadd.f32 %v387_v39, %v386_v34 }
  0xa3   :  { %v401_v45 = vsel %vm383_vm1, %v396_v40, 0.0  ;;  %v403_v48 = vsel %vm383_vm1, %v397_v46, 0.0 }
  0xa4   :  { %v390_v44 = vadd.f32 %v389_v41, %v388_v42  ;;  %v402_v47 = vadd.f32 %v401_v45, %v400_v43 }
  0xa6   :  { %391 = vadd.xlane.f32.xlu0 %v390_v44  ;;  %v404_v49 = vadd.f32 %v403_v48, %v402_v47 }
  0xae   :  { %405 = vadd.xlane.f32.xlu0 %v404_v49 }
 0x119   :  { %v392_v50 = vpop.xlane.xlu0 %391 }
 0x11a   :  { %v393_v51 = vmul.f32 0.001953125, %v392_v50 }
 0x11c   :  { %v408_v54 = vmul.f32 %v393_v51, %v393_v51 }
 0x121   :  { %v406_v53 = vpop.xlane.xlu0 %405 }
 0x122   :  { %v407_v55 = vmul.f32 0.001953125, %v406_v53 }
 0x124   :  { %v409_v56 = vsub.f32 %v407_v55, %v408_v54 }
 0x126   :  { %v410_v57 = vadd.f32 1e-05, %v409_v56 }
 0x128   :  { %496 = vrsqrt.f32 %v410_v57  ;;  %vm417_vm3 = vweird.f32 %v410_v57 }
 0x12e   :  { %v497_v58 = vpop.eup %496 }
 0x12f   :  { %v412_v59 = vmul.f32 %v497_v58, %v410_v57  ;;  %vm418_vm2 = vweird.f32 %v497_v58 }
 0x130   :  { %vm419_vm4 = vmor %vm417_vm3, %vm418_vm2 }
 0x131   :  { %v413_v60 = vmul.f32 %v497_v58, %v412_v59 }
 0x133   :  { %v414_v61 = vmul.f32 0.5, %v413_v60 }
 0x135   :  { %v415_v62 = vsub.f32 1.5, %v414_v61 }
 0x137   :  { %v416_v0 = vmul.f32 %v497_v58, %v415_v62 }
 0x139   :  { %v420_v1 = vsel %vm419_vm4, %v497_v58, %v416_v0 }
 0x13a   :  { %v421_v2 = vmul.f32 %v420_v1, %v382_v63 }
 0x13c   :  { %v422_v3 = vmul.f32 %v421_v2, %v393_v51 }
 0x13e   :  { %424 = vrot.lane.b32.xlu1 %v422_v3, %s499_s22 }
 0x146   :  { %430 = vperm.xlu1 %493, %v421_v2  }
 0x1b0   :  { %v425_v5 = vpop.permute.xlu1 %424 }
 0x1b1   :  { %v427_v6 = vsub.f32 %v382_v63, %v425_v5 }
 0x1b3   :  { %439 = vperm.xlu2 %494, %v427_v6  }
 0x1b8   :  { %v431_v7 = vpop.permute.xlu1 %430 }
 0x1b9   :  { %v433_v8 = vmul.f32 %v431_v7, %v319_v28  ;;  %v434_v9 = vmul.f32 %v431_v7, %v339_v29  ;;  %v435_v10 = vmul.f32 %v431_v7, %v359_v36  ;;  %v436_v11 = vmul.f32 %v431_v7, %v379_v37 }
 0x20d   :  { %v440_v12 = vpop.permute.xlu2 %439 }
 0x20e   :  { %v442_v13 = vadd.f32 %v440_v12, %v433_v8  ;;  %v443_v14 = vadd.f32 %v440_v12, %v434_v9  ;;  %v444_v15 = vadd.f32 %v440_v12, %v435_v10  ;;  %v445_v16 = vadd.f32 %v440_v12, %v436_v11 }
 0x210   :  { %v447_v17 = vmax.f32 %v443_v14, 0.0  ;;  %v449_v18 = vmax.f32 %v445_v16, 0.0  ;;  %v446_v19 = vmax.f32 %v442_v13, 0.0  ;;  %v448_v20 = vmax.f32 %v444_v15, 0.0 }
 0x212   :  { %v454_v21 = vrot.slane %v447_v17, 4  ;;  %v455_v22 = vrot.slane %v449_v18, 4 }
 0x214   :  { %v456_v23 = vsel %vm383_vm1, %v446_v19, %v454_v21  ;;  %v457_v24 = vsel %vm383_vm1, %v448_v20, %v455_v22 }
 0x215   :  { %460 = vst [vmem:[%s655_s9] sm:$0xff] %v456_v23 }
 0x216   :  { %461 = vst [vmem:[%s655_s9 + $0x8] sm:$0xff] %v457_v24 }

// kernel: _lambda_.4
= control target key start
LH: loop header
LB: loop body
LE: loop exit
PB: predicated region body
PF: predicated region fallthrough
CT: control target
= control target key end

     0   :  { %s418_s15 = smov 124   ;;  %vm50_vm0 = vcmask 1043456   ;;  %vm47_vm1 = vcmask 31744   ;;  %vm194_vm2 = vcmask 261120   ;;  %vm324_vm3 = vcmask 654336   ;;  %s569_s2 = inlined_call_operand.vmem [shape: f32[8,8], index: 2, kind: input, shape index: {}]   ;;  %s570_s1 = inlined_call_operand.vmem [shape: f32[4,288], index: 1, kind: input, shape index: {}]   ;;  %s571_s5 = inlined_call_operand.vmem [shape: f32[8,8], index: 5, kind: input, shape index: {}]   ;;  %s572_s0 = inlined_call_operand.vmem [shape: f32[4,288], index: 0, kind: input, shape index: {}]   ;;  %s573_s4 = inlined_call_operand.vmem [shape: f32[4,80], index: 4, kind: input, shape index: {}]   ;;  %s574_s3 = inlined_call_operand.vmem [shape: f32[4,80], index: 3, kind: input, shape index: {}]   ;;  %s575_s6 = inlined_call_operand.vmem [shape: f32[8,4], index: 6, kind: input, shape index: {}]   ;;  %s576_s7 = inlined_call_operand.vmem [shape: f32[4,288], index: 7, kind: output, shape index: {0}]   ;;  %s577_s8 = inlined_call_operand.vmem [shape: f32[4,288], index: 8, kind: output, shape index: {1}]   ;;  %s578_s9 = inlined_call_operand.vmem [shape: f32[4,80], index: 9, kind: output, shape index: {2}]   ;;  %s579_s10 = inlined_call_operand.vmem [shape: f32[4,80], index: 10, kind: output, shape index: {3}]  }
   0x1   :  { %v31_v0 = vld [vmem:[%s569_s2] sm:$0xff]  ;;  %v35_v7 = vld [vmem:[%s570_s1 + $0x8] sm:$0xf]  ;;  %v419_v41 = vmov 0   ;;  %vm254_vm10 = vcmask 257024   ;;  %vm367_vm11 = vcmask 650240  }
   0x2   :  { %37 = vrot.lane.b32.xlu0 %v31_v0, %s418_s15  ;;  %v34_v1 = vld [vmem:[%s570_s1] sm:$0xff]  ;;  %43 = vst [vmem:[#allocation1 + $0x10] ss:$2 sm:$0xff] %v35_v7  ;;  %v33_v8 = vld [vmem:[%s572_s0 + $0x8] sm:$0xf]  ;;  %409 = vset.pattern.permute.xlu2 %v419_v41  ;;  %vm369_vm12 = vcmask 654340  }
   0x3   :  { %41 = vst [vmem:[#allocation1] ss:$2 sm:$0xff] %v34_v1  ;;  %v268_v2 = vld [vmem:[%s571_s5] sm:$0xff] }
   0x4   :  { %v32_v3 = vld [vmem:[%s572_s0] sm:$0xff] }
   0x5   :  { %v270_v12 = vld [vmem:[%s573_s4] sm:$0xf]  ;;  %s420_s4 = smov 1  }
   0x6   :  { %v269_v13 = vld [vmem:[%s574_s3] sm:$0xf] }
   0x9   :  { %v46_v9 = vld.sshfl [vmem:[#allocation1 + $0x10] sm:$0xff pattern:$0x75316420] }
   0xa   :  { %272 = vrot.lane.b32.xlu0 %v268_v2, %s418_s15  ;;  %v44_v4 = vld.sshfl [vmem:[#allocation1] sm:$0xff pattern:$0x75316420]  ;;  %v45_v5 = vld.sshfl [vmem:[#allocation1 + $0x8] sm:$0xff pattern:$0x75316420]  ;;  %391 = vmatpush.msk.msra.mxu2 %vm50_vm0, %v46_v9 }
   0xb   :  { %119 = vst [vmem:[#allocation1] ss:$2 sm:$0xff] %v32_v3  ;;  %387 = vmatpush.msk.msra.mxu0 %vm50_vm0, %v44_v4  ;;  %389 = vmatpush.msk.msra.mxu1 %vm50_vm0, %v45_v5 }
   0xc   :  { %121 = vst [vmem:[#allocation1 + $0x10] ss:$2 sm:$0xff] %v33_v8  ;;  %399 = vmatpush.msk.msrb.mxu2 %vm50_vm0, %v270_v12 }
  0x12   :  { %v122_v6 = vld.sshfl [vmem:[#allocation1] sm:$0xff pattern:$0x75316420]  ;;  %v123_v10 = vld.sshfl [vmem:[#allocation1 + $0x8] sm:$0xff pattern:$0x75316420] }
  0x13   :  { %393 = vmatpush.msk.msra.mxu3 %vm50_vm0, %v122_v6  ;;  %395 = vmatpush.msk.msrb.mxu0 %vm50_vm0, %v123_v10  ;;  %v124_v11 = vld.sshfl [vmem:[#allocation1 + $0x10] sm:$0xff pattern:$0x75316420]  ;;  %v421_v10 = vmov 1  }
  0x14   :  { %394 = vmatmul.msk.f32.vlgmr.msra.gmra.mxu3 %vm47_vm1, %v31_v0  ;;  %397 = vmatpush.msk.msrb.mxu1 %vm50_vm0, %v124_v11  ;;  %v422_v11 = vmov 3  }
  0x15   :  { %401 = vmatpush.msk.msrb.mxu3 %vm50_vm0, %v269_v13  ;;  %410 = vset.pattern.permute.xlu0 %v421_v10 }
  0x1c   :  { %402 = vmatmul.msk.f32.vlgmr.msrb.gmra.mxu3 %vm47_vm1, %v268_v2 }
  0x74   :  { %v38_v14 = vpop.permute.xlu0 %37 }
  0x75   :  { %388 = vmatmul.msk.f32.vlgmr.msra.gmra.mxu0 %vm47_vm1, %v38_v14  ;;  %390 = vmatmul.msk.f32.vlgmr.msra.gmra.mxu1 %vm47_vm1, %v38_v14 }
  0x76   :  { %392 = vmatmul.msk.f32.vlgmr.msra.gmra.mxu2 %vm47_vm1, %v38_v14 }
  0x7c   :  { %v273_v15 = vpop.permute.xlu0 %272 }
  0x7d   :  { %396 = vmatmul.msk.f32.vlgmr.msrb.gmra.mxu0 %vm47_vm1, %v31_v0  ;;  %398 = vmatmul.msk.f32.vlgmr.msrb.gmra.mxu1 %vm47_vm1, %v31_v0  ;;  %v30_v0 = vld [vmem:[%s575_s6] sm:$0xff] }
  0x7e   :  { %400 = vmatmul.msk.f32.vlgmr.msrb.gmra.mxu2 %vm47_vm1, %v273_v15 }
  0x97   :  { %v150_v18 = vpop.f32.mrf.mxu3 }
  0x9f   :  { %v321_v28 = vpop.f32.mrf.mxu3 }
  0xf2   :  { %v74_v16 = vpop.f32.mrf.mxu0  ;;  %v94_v17 = vpop.f32.mrf.mxu1 }
  0xf3   :  { %v519_v22 = vadd.f32 %v150_v18, %v74_v16  ;;  %v423_v16 = vmov 2  }
  0xf5   :  { %v200_v31 = vmul.f32 %v519_v22, %v519_v22 }
  0xf9   :  { %v114_v19 = vpop.f32.mrf.mxu2 }
  0xfa   :  { %v170_v20 = vpop.f32.mrf.mxu0  ;;  %v190_v21 = vpop.f32.mrf.mxu1 }
  0xfb   :  { %v521_v23 = vadd.f32 %v170_v20, %v94_v17  ;;  %v523_v24 = vadd.f32 %v190_v21, %v114_v19 }
  0xfd   :  { %v193_v25 = vadd.f32 %v521_v23, %v519_v22  ;;  %v195_v26 = vsel %vm194_vm2, %v523_v24, 0.0  ;;  %v201_v27 = vmul.f32 %v521_v23, %v521_v23  ;;  %v202_v30 = vmul.f32 %v523_v24, %v523_v24 }
  0xff   :  { %v196_v29 = vadd.f32 %v195_v26, %v193_v25  ;;  %v203_v34 = vadd.f32 %v201_v27, %v200_v31  ;;  %v204_v36 = vsel %vm194_vm2, %v202_v30, 0.0 }
 0x101   :  { %v296_v32 = vpop.f32.mrf.mxu2  ;;  %197 = vadd.xlane.f32.xlu1 %v196_v29  ;;  %v205_v38 = vadd.f32 %v204_v36, %v203_v34 }
 0x102   :  { %v535_v33 = vadd.f32 %v321_v28, %v296_v32 }
 0x104   :  { %v325_v35 = vsel %vm324_vm3, %v535_v33, 0.0  ;;  %v329_v37 = vmul.f32 %v535_v33, %v535_v33 }
 0x105   :  { %326 = vadd.xlane.f32.xlu2 %v325_v35 }
 0x106   :  { %v330_v39 = vsel %vm324_vm3, %v329_v37, 0.0 }
 0x109   :  { %206 = vadd.xlane.f32.xlu1 %v205_v38 }
 0x10d   :  { %331 = vadd.xlane.f32.xlu2 %v330_v39 }
 0x174   :  { %v198_v40 = vpop.xlane.xlu1 %197 }
 0x175   :  { %v199_v43 = vmul.f32 0.0034722222, %v198_v40 }
 0x177   :  { %v209_v46 = vmul.f32 %v199_v43, %v199_v43 }
 0x178   :  { %v327_v42 = vpop.xlane.xlu2 %326 }
 0x179   :  { %v328_v44 = vmul.f32 0.0125, %v327_v42 }
 0x17b   :  { %v334_v48 = vmul.f32 %v328_v44, %v328_v44 }
 0x17c   :  { %v207_v45 = vpop.xlane.xlu1 %206 }
 0x17d   :  { %v208_v47 = vmul.f32 0.0034722222, %v207_v45 }
 0x17f   :  { %v210_v49 = vsub.f32 %v208_v47, %v209_v46 }
 0x180   :  { %v332_v50 = vpop.xlane.xlu2 %331 }
 0x181   :  { %v211_v51 = vadd.f32 1e-05, %v210_v49  ;;  %v333_v52 = vmul.f32 0.0125, %v332_v50 }
 0x183   :  { %414 = vrsqrt.f32 %v211_v51  ;;  %v335_v53 = vsub.f32 %v333_v52, %v334_v48  ;;  %vm218_vm5 = vweird.f32 %v211_v51 }
 0x185   :  { %v336_v54 = vadd.f32 1e-05, %v335_v53 }
 0x187   :  { %416 = vrsqrt.f32 %v336_v54  ;;  %vm343_vm6 = vweird.f32 %v336_v54 }
 0x189   :  { %v415_v55 = vpop.eup %414 }
 0x18a   :  { %v213_v56 = vmul.f32 %v415_v55, %v211_v51  ;;  %vm219_vm4 = vweird.f32 %v415_v55 }
 0x18b   :  { %vm220_vm8 = vmor %vm218_vm5, %vm219_vm4 }
 0x18c   :  { %v214_v57 = vmul.f32 %v415_v55, %v213_v56 }
 0x18d   :  { %v417_v58 = vpop.eup %416 }
 0x18e   :  { %v215_v59 = vmul.f32 0.5, %v214_v57  ;;  %v338_v60 = vmul.f32 %v417_v58, %v336_v54  ;;  %vm344_vm7 = vweird.f32 %v417_v58 }
 0x18f   :  { %vm345_vm9 = vmor %vm343_vm6, %vm344_vm7 }
 0x190   :  { %v216_v61 = vsub.f32 1.5, %v215_v59  ;;  %v339_v62 = vmul.f32 %v417_v58, %v338_v60 }
 0x192   :  { %v340_v63 = vmul.f32 0.5, %v339_v62  ;;  %v217_v1 = vmul.f32 %v415_v55, %v216_v61 }
 0x194   :  { %v341_v2 = vsub.f32 1.5, %v340_v63  ;;  %v221_v3 = vsel %vm220_vm8, %v415_v55, %v217_v1 }
 0x195   :  { %v222_v4 = vmul.f32 %v221_v3, %v30_v0 }
 0x196   :  { %v342_v5 = vmul.f32 %v417_v58, %v341_v2 }
 0x197   :  { %231 = vperm.xlu2 %409, %v222_v4   ;;  %v223_v6 = vmul.f32 %v222_v4, %v199_v43 }
 0x198   :  { %v346_v7 = vsel %vm345_vm9, %v417_v58, %v342_v5 }
 0x199   :  { %225 = vrot.lane.b32.xlu0 %v223_v6, %s420_s4  ;;  %v347_v8 = vmul.f32 %v346_v7, %v30_v0 }
 0x19b   :  { %v348_v9 = vmul.f32 %v347_v8, %v328_v44 }
 0x19d   :  { %350 = vrot.lane.b32.xlu1 %v348_v9, %s420_s4 }
 0x19f   :  { %412 = vset.pattern.permute.xlu2 %v422_v11 }
 0x1f1   :  { %v232_v17 = vpop.permute.xlu2 %231 }
 0x1f2   :  { %v234_v18 = vmul.f32 %v232_v17, %v519_v22  ;;  %v235_v19 = vmul.f32 %v232_v17, %v521_v23  ;;  %v236_v20 = vmul.f32 %v232_v17, %v523_v24 }
 0x20b   :  { %v226_v12 = vpop.permute.xlu0 %225 }
 0x20c   :  { %v228_v13 = vsub.f32 %v30_v0, %v226_v12 }
 0x20e   :  { %239 = vperm.xlu0 %410, %v228_v13  }
 0x20f   :  { %v351_v14 = vpop.permute.xlu1 %350 }
 0x210   :  { %v353_v15 = vsub.f32 %v30_v0, %v351_v14 }
 0x212   :  { %362 = vperm.xlu2 %412, %v353_v15  }
 0x216   :  { %411 = vset.pattern.permute.xlu0 %v423_v16 }
 0x217   :  { %356 = vperm.xlu0 %411, %v347_v8  }
 0x21f   :  { %413 = vset.pattern.permute.xlu0 %v422_v11 }
 0x26c   :  { %v363_v32 = vpop.permute.xlu2 %362 }
 0x280   :  { %v240_v21 = vpop.permute.xlu0 %239 }
 0x281   :  { %v242_v25 = vadd.f32 %v240_v21, %v234_v18  ;;  %v243_v26 = vadd.f32 %v240_v21, %v235_v19  ;;  %v244_v27 = vadd.f32 %v240_v21, %v236_v20 }
 0x283   :  { %v245_v28 = vmax.f32 %v242_v25, 0.0  ;;  %v246_v29 = vmax.f32 %v243_v26, 0.0  ;;  %v247_v30 = vmax.f32 %v244_v27, 0.0 }
 0x285   :  { %v250_v31 = vrot.slane %v246_v29, 4  ;;  %255 = vst.msk [vmem:[%s576_s7 + $0x8] sm:$0xf] %vm254_vm10, %v247_v30 }
 0x286   :  { %257 = vst.sshfl [vmem:[#allocation1] sm:$0xff pattern:$0x75316420] %v245_v28 }
 0x287   :  { %v251_v22 = vsel %vm50_vm0, %v245_v28, %v250_v31  ;;  %258 = vst.sshfl [vmem:[#allocation1 + $0x8] sm:$0xff pattern:$0x75316420] %v246_v29 }
 0x288   :  { %253 = vst [vmem:[%s576_s7] sm:$0xff] %v251_v22 }
 0x289   :  { %259 = vst.sshfl [vmem:[#allocation1 + $0x10] sm:$0xff pattern:$0x75316420] %v247_v30  ;;  %v357_v23 = vpop.permute.xlu0 %356 }
 0x28a   :  { %v359_v24 = vmul.f32 %v357_v23, %v535_v33 }
 0x28c   :  { %v365_v34 = vadd.f32 %v363_v32, %v359_v24 }
 0x28e   :  { %v261_v35 = vld [vmem:[#allocation1 + $0x1] ss:$2 sm:$0xff]  ;;  %v366_v36 = vmax.f32 %v365_v34, 0.0 }
 0x28f   :  { %266 = vst [vmem:[%s577_s8] sm:$0xff] %v261_v35 }
 0x290   :  { %v263_v37 = vld [vmem:[#allocation1 + $0x11] ss:$2 sm:$0xff]  ;;  %368 = vst.msk [vmem:[%s578_s9] sm:$0xf] %vm367_vm11, %v366_v36 }
 0x291   :  { %267 = vst.msk [vmem:[%s577_s8 + $0x8] sm:$0xf] %vm254_vm10, %v263_v37 }
 0x292   :  { %370 = vst.msk [vmem:[%s579_s10 - $0x4] sm:$0xf0] %vm369_vm12, %v366_v36 }

// kernel: reverse.1
= control target key start
LH: loop header
LB: loop body
LE: loop exit
PB: predicated region body
PF: predicated region fallthrough
CT: control target
= control target key end

     0   :  { %v79_v8 = vld [vmem:[#allocation1 + $0x38] sm:$0xf]  ;;  %v87_v9 = vld [vmem:[#allocation1 + $0x30] sm:$0xf]  ;;  %v95_v10 = vld [vmem:[#allocation1 + $0x28] sm:$0xf]  ;;  %v144_v16 = vlaneseq  ;;  %s447_s0 = inlined_call_operand.vmem [shape: f32[4,2,8,3], index: 0, kind: input, shape index: {}]   ;;  %s448_s1 = inlined_call_operand.vmem [shape: f32[4,2,8,3], index: 1, kind: output, shape index: {}]  }
   0x1   :  { %v19_v0 = vld [vmem:[%s447_s0] sm:$0xf]  ;;  %v21_v1 = vld [vmem:[%s447_s0 + $0x4] sm:$0xf]  ;;  %v23_v2 = vld [vmem:[%s447_s0 + $0x8] sm:$0xf] }
   0x2   :  { %20 = vst [vmem:[#allocation1 + $0x4] sm:$0xf] %v19_v0  ;;  %v25_v3 = vld [vmem:[%s447_s0 + $0xc] sm:$0xf]  ;;  %v27_v4 = vld [vmem:[%s447_s0 + $0x10] sm:$0xf] }
   0x3   :  { %22 = vst [vmem:[#allocation1 + $0xc] sm:$0xf] %v21_v1  ;;  %v29_v5 = vld [vmem:[%s447_s0 + $0x14] sm:$0xf]  ;;  %v31_v6 = vld [vmem:[%s447_s0 + $0x18] sm:$0xf] }
   0x4   :  { %24 = vst [vmem:[#allocation1 + $0x14] sm:$0xf] %v23_v2  ;;  %v33_v7 = vld [vmem:[%s447_s0 + $0x1c] sm:$0xf]  ;;  %v103_v11 = vld [vmem:[#allocation1 + $0x20] sm:$0xf] }
   0x5   :  { %26 = vst [vmem:[#allocation1 + $0x1c] sm:$0xf] %v25_v3  ;;  %v111_v18 = vld [vmem:[#allocation1 + $0x18] sm:$0xf]  ;;  %v119_v20 = vld [vmem:[#allocation1 + $0x10] sm:$0xf] }
   0x6   :  { %28 = vst [vmem:[#allocation1 + $0x24] sm:$0xf] %v27_v4  ;;  %v127_v21 = vld [vmem:[#allocation1 + $0x8] sm:$0xf]  ;;  %v145_v23 = vshrl.u32 %v144_v16, 7 }
   0x7   :  { %30 = vst [vmem:[#allocation1 + $0x2c] sm:$0xf] %v29_v5  ;;  %v134_v28 = vld [vmem:[#allocation1] sm:$0xf] }
   0x8   :  { %32 = vst [vmem:[#allocation1 + $0x34] sm:$0xf] %v31_v6  ;;  %vm146_vm0 = vcmp.lt.s32.totalorder %v145_v23, 3 }
   0x9   :  { %34 = vst [vmem:[#allocation1 + $0x3c] sm:$0xf] %v33_v7  ;;  %v131_v24 = vld [vmem:[#allocation1 + $0x4] sm:$0xf] }
   0xa   :  { %81 = vst [vmem:[#allocation0 + $0x70] sm:$0xf] %v79_v8  ;;  %v123_v22 = vld [vmem:[#allocation1 + $0xc] sm:$0xf] }
   0xb   :  { %89 = vst [vmem:[#allocation0 + $0x60] sm:$0xf] %v87_v9  ;;  %v115_v19 = vld [vmem:[#allocation1 + $0x14] sm:$0xf] }
   0xc   :  { %97 = vst [vmem:[#allocation0 + $0x50] sm:$0xf] %v95_v10  ;;  %v107_v15 = vld [vmem:[#allocation1 + $0x1c] sm:$0xf] }
   0xd   :  { %v99_v12 = vld [vmem:[#allocation1 + $0x24] sm:$0xf]  ;;  %105 = vst [vmem:[#allocation0 + $0x40] sm:$0xf] %v103_v11 }
   0xe   :  { %v91_v13 = vld [vmem:[#allocation1 + $0x2c] sm:$0xf]  ;;  %101 = vst [vmem:[#allocation0 + $0x48] sm:$0xf] %v99_v12 }
   0xf   :  { %v83_v14 = vld [vmem:[#allocation1 + $0x34] sm:$0xf]  ;;  %93 = vst [vmem:[#allocation0 + $0x58] sm:$0xf] %v91_v13 }
  0x10   :  { %v75_v17 = vld [vmem:[#allocation1 + $0x3c] sm:$0xf]  ;;  %85 = vst [vmem:[#allocation0 + $0x68] sm:$0xf] %v83_v14 }
  0x11   :  { %77 = vst [vmem:[#allocation0 + $0x78] sm:$0xf] %v75_v17  ;;  %v235_v52 = vld [vmem:[#allocation0 + $0x77] ss:$-1 sm:$0xff] }
  0x12   :  { %109 = vst [vmem:[#allocation0 + $0x38] sm:$0xf] %v107_v15  ;;  %v221_v46 = vld [vmem:[#allocation0 + $0x67] ss:$-1 sm:$0xff]  ;;  %v236_v56 = vrot.slane %v235_v52, 5 }
  0x13   :  { %113 = vst [vmem:[#allocation0 + $0x30] sm:$0xf] %v111_v18  ;;  %v207_v27 = vld [vmem:[#allocation0 + $0x57] ss:$-1 sm:$0xff]  ;;  %v222_v53 = vrot.slane %v221_v46, 5 }
  0x14   :  { %117 = vst [vmem:[#allocation0 + $0x28] sm:$0xf] %v115_v19  ;;  %v193_v25 = vld [vmem:[#allocation0 + $0x47] ss:$-1 sm:$0xff]  ;;  %v208_v31 = vrot.slane %v207_v27, 5 }
  0x15   :  { %121 = vst [vmem:[#allocation0 + $0x20] sm:$0xf] %v119_v20  ;;  %v198_v26 = vld [vmem:[#allocation0 + $0x4f] ss:$-1 sm:$0xff]  ;;  %v194_v29 = vrot.slane %v193_v25, 5 }
  0x16   :  { %125 = vst [vmem:[#allocation0 + $0x18] sm:$0xf] %v123_v22  ;;  %v199_v30 = vrot.slane %v198_v26, 5  ;;  %v212_v43 = vld [vmem:[#allocation0 + $0x5f] ss:$-1 sm:$0xff] }
  0x17   :  { %129 = vst [vmem:[#allocation0 + $0x10] sm:$0xf] %v127_v21  ;;  %v226_v49 = vld [vmem:[#allocation0 + $0x6f] ss:$-1 sm:$0xff]  ;;  %v213_v51 = vrot.slane %v212_v43, 5 }
  0x18   :  { %133 = vst [vmem:[#allocation0 + $0x8] sm:$0xf] %v131_v24  ;;  %v240_v54 = vld [vmem:[#allocation0 + $0x7f] ss:$-1 sm:$0xff]  ;;  %v227_v55 = vrot.slane %v226_v49, 5 }
  0x19   :  { %135 = vst [vmem:[#allocation0] sm:$0xf] %v134_v28  ;;  %v184_v32 = vld [vmem:[#allocation0 + $0x3f] ss:$-1 sm:$0xff]  ;;  %v241_v57 = vrot.slane %v240_v54, 5 }
  0x1a   :  { %v179_v33 = vld [vmem:[#allocation0 + $0x37] ss:$-1 sm:$0xff]  ;;  %v185_v34 = vrot.slane %v184_v32, 5  ;;  %195 = vst [vmem:[#allocation2 + $0x20] sm:$0xff] %v194_v29 }
  0x1b   :  { %v170_v35 = vld [vmem:[#allocation0 + $0x2f] ss:$-1 sm:$0xff]  ;;  %v180_v36 = vrot.slane %v179_v33, 5  ;;  %203 = vst.msk [vmem:[#allocation2 + $0x20] sm:$0xff] %vm146_vm0, %v199_v30 }
  0x1c   :  { %v165_v37 = vld [vmem:[#allocation0 + $0x27] ss:$-1 sm:$0xff]  ;;  %v171_v38 = vrot.slane %v170_v35, 5  ;;  %209 = vst [vmem:[#allocation2 + $0x28] sm:$0xff] %v208_v31 }
  0x1d   :  { %v156_v39 = vld [vmem:[#allocation0 + $0x1f] ss:$-1 sm:$0xff]  ;;  %v166_v40 = vrot.slane %v165_v37, 5  ;;  %181 = vst [vmem:[#allocation2 + $0x18] sm:$0xff] %v180_v36 }
  0x1e   :  { %v151_v41 = vld [vmem:[#allocation0 + $0x17] ss:$-1 sm:$0xff]  ;;  %v157_v42 = vrot.slane %v156_v39, 5  ;;  %189 = vst.msk [vmem:[#allocation2 + $0x18] sm:$0xff] %vm146_vm0, %v185_v34 }
  0x1f   :  { %v142_v44 = vld [vmem:[#allocation0 + $0xf] ss:$-1 sm:$0xff]  ;;  %v152_v45 = vrot.slane %v151_v41, 5  ;;  %167 = vst [vmem:[#allocation2 + $0x10] sm:$0xff] %v166_v40 }
  0x20   :  { %v137_v47 = vld [vmem:[#allocation0 + $0x7] ss:$-1 sm:$0xff]  ;;  %v143_v48 = vrot.slane %v142_v44, 5  ;;  %175 = vst.msk [vmem:[#allocation2 + $0x10] sm:$0xff] %vm146_vm0, %v171_v38 }
  0x21   :  { %v138_v50 = vrot.slane %v137_v47, 5  ;;  %153 = vst [vmem:[#allocation2 + $0x8] sm:$0xff] %v152_v45 }
  0x22   :  { %161 = vst.msk [vmem:[#allocation2 + $0x8] sm:$0xff] %vm146_vm0, %v157_v42  ;;  %v271_v62 = vld [vmem:[#allocation2 + $0x20] sm:$0xf] }
  0x23   :  { %139 = vst [vmem:[#allocation2] sm:$0xff] %v138_v50 }
  0x24   :  { %147 = vst.msk [vmem:[#allocation2] sm:$0xff] %vm146_vm0, %v143_v48 }
  0x25   :  { %217 = vst.msk [vmem:[#allocation2 + $0x28] sm:$0xff] %vm146_vm0, %v213_v51  ;;  %v265_v60 = vld [vmem:[#allocation2 + $0x18] sm:$0xf] }
  0x26   :  { %223 = vst [vmem:[#allocation2 + $0x30] sm:$0xff] %v222_v53 }
  0x27   :  { %231 = vst.msk [vmem:[#allocation2 + $0x30] sm:$0xff] %vm146_vm0, %v227_v55  ;;  %v259_v58 = vld [vmem:[#allocation2 + $0x10] sm:$0xf] }
  0x28   :  { %237 = vst [vmem:[#allocation2 + $0x38] sm:$0xff] %v236_v56 }
  0x29   :  { %245 = vst.msk [vmem:[#allocation2 + $0x38] sm:$0xff] %vm146_vm0, %v241_v57  ;;  %v253_v59 = vld [vmem:[#allocation2 + $0x8] sm:$0xf] }
  0x2a   :  { %257 = vst [vmem:[#allocation3 + $0x4] sm:$0xf] %v253_v59 }
  0x2b   :  { %v248_v61 = vld [vmem:[#allocation2] sm:$0xf]  ;;  %263 = vst [vmem:[#allocation3 + $0x8] sm:$0xf] %v259_v58 }
  0x2c   :  { %251 = vst [vmem:[#allocation3] sm:$0xf] %v248_v61  ;;  %v277_v63 = vld [vmem:[#allocation2 + $0x28] sm:$0xf] }
  0x2d   :  { %269 = vst [vmem:[#allocation3 + $0xc] sm:$0xf] %v265_v60 }
  0x2e   :  { %275 = vst [vmem:[#allocation3 + $0x10] sm:$0xf] %v271_v62  ;;  %v283_v0 = vld [vmem:[#allocation2 + $0x30] sm:$0xf] }
  0x2f   :  { %281 = vst [vmem:[#allocation3 + $0x14] sm:$0xf] %v277_v63 }
  0x30   :  { %287 = vst [vmem:[#allocation3 + $0x18] sm:$0xf] %v283_v0  ;;  %v289_v1 = vld [vmem:[#allocation2 + $0x38] sm:$0xf] }
  0x31   :  { %293 = vst [vmem:[#allocation3 + $0x1c] sm:$0xf] %v289_v1 }
  0x33   :  { %v310_v2 = vld [vmem:[#allocation3] sm:$0xff]  }
  0x34   :  { %311 = vst [vmem:[%s448_s1] sm:$0xff] %v310_v2   ;;  %v314_v3 = vld [vmem:[#allocation3 + $0x8] sm:$0xff]  }
  0x35   :  { %315 = vst [vmem:[%s448_s1 + $0x8] sm:$0xff] %v314_v3  }
  0x36   :  { %v318_v4 = vld [vmem:[#allocation3 + $0x10] sm:$0xff]  }
  0x37   :  { %319 = vst [vmem:[%s448_s1 + $0x10] sm:$0xff] %v318_v4  }
  0x38   :  { %v322_v5 = vld [vmem:[#allocation3 + $0x18] sm:$0xff]  }
  0x39   :  { %323 = vst [vmem:[%s448_s1 + $0x18] sm:$0xff] %v322_v5  }

// kernel: tile.9
= control target key start
LH: loop header
LB: loop body
LE: loop exit
PB: predicated region body
PF: predicated region fallthrough
CT: control target
= control target key end

     0   :  { %vm517_vm0 = vcmask 1041409   ;;  %vm521_vm1 = vcmask 1042434   ;;  %vm525_vm2 = vcmask 1043459   ;;  %vm529_vm3 = vcmask 1044484   ;;  %s1846_s17 = smov 120   ;;  %s1847_s18 = smov 112   ;;  %s2569_s0 = inlined_call_operand.vmem [shape: f32[4,2,2,8,2,8], index: 0, kind: input, shape index: {}]   ;;  %s2570_s1 = inlined_call_operand.vmem [shape: f32[4,512], index: 1, kind: output, shape index: {}]  }
   0x1   :  { %v1717_v0 = vld [vmem:[%s2569_s0 + $0xde] sm:$0x3]  ;;  %v1725_v1 = vld [vmem:[%s2569_s0 + $0xce] sm:$0x3]  ;;  %vm533_vm4 = vcmask 1045509   ;;  %vm537_vm5 = vcmask 1046534  }
   0x2   :  { %v1749_v2 = vld [vmem:[%s2569_s0 + $0x9e] sm:$0x3]  ;;  %71 = vst [vmem:[#allocation1 + $0x378] sm:$0x3] %v1717_v0  ;;  %v1757_v3 = vld [vmem:[%s2569_s0 + $0x8e] sm:$0x3] }
   0x3   :  { %103 = vst [vmem:[#allocation1 + $0x338] sm:$0x3] %v1725_v1  ;;  %v1781_v4 = vld [vmem:[%s2569_s0 + $0x5e] sm:$0x3]  ;;  %v1789_v5 = vld [vmem:[%s2569_s0 + $0x4e] sm:$0x3] }
   0x4   :  { %199 = vst [vmem:[#allocation1 + $0x278] sm:$0x3] %v1749_v2  ;;  %v1813_v6 = vld [vmem:[%s2569_s0 + $0x1e] sm:$0x3]  ;;  %v1821_v7 = vld [vmem:[%s2569_s0 + $0xe] sm:$0x3] }
   0x5   :  { %231 = vst [vmem:[#allocation1 + $0x238] sm:$0x3] %v1757_v3  ;;  %v1701_v8 = vld [vmem:[%s2569_s0 + $0xfe] sm:$0x3]  ;;  %v1709_v9 = vld [vmem:[%s2569_s0 + $0xee] sm:$0x3] }
   0x6   :  { %327 = vst [vmem:[#allocation1 + $0x178] sm:$0x3] %v1781_v4  ;;  %v1733_v10 = vld [vmem:[%s2569_s0 + $0xbe] sm:$0x3]  ;;  %v1741_v11 = vld [vmem:[%s2569_s0 + $0xae] sm:$0x3] }
   0x7   :  { %359 = vst [vmem:[#allocation1 + $0x138] sm:$0x3] %v1789_v5  ;;  %v1765_v18 = vld [vmem:[%s2569_s0 + $0x7e] sm:$0x3]  ;;  %v1773_v23 = vld [vmem:[%s2569_s0 + $0x6e] sm:$0x3] }
   0x8   :  { %455 = vst [vmem:[#allocation1 + $0x78] sm:$0x3] %v1813_v6  ;;  %v1797_v26 = vld [vmem:[%s2569_s0 + $0x3e] sm:$0x3]  ;;  %v1805_v27 = vld [vmem:[%s2569_s0 + $0x2e] sm:$0x3] }
   0x9   :  { %487 = vst [vmem:[#allocation1 + $0x38] sm:$0x3] %v1821_v7  ;;  %vm541_vm6 = vcmask 1047559   ;;  %v609_v37 = vld [vmem:[#allocation1 + $0x372] sm:$0x80]   ;;  %s1848_s30 = smov 96  }
   0xa   :  { %7 = vst [vmem:[#allocation1 + $0x3f8] sm:$0x3] %v1701_v8  ;;  %v593_v15 = vld [vmem:[#allocation1 + $0x336] sm:$0x8]   ;;  %v666_v17 = vld [vmem:[#allocation1 + $0x335] sm:$0x8]  }
   0xb   :  { %39 = vst [vmem:[#allocation1 + $0x3b8] sm:$0x3] %v1709_v9  ;;  %v605_v33 = vld [vmem:[#allocation1 + $0x273] sm:$0x40]   ;;  %v678_v35 = vld [vmem:[#allocation1 + $0x272] sm:$0x40]  }
   0xc   :  { %135 = vst [vmem:[#allocation1 + $0x2f8] sm:$0x3] %v1733_v10  ;;  %v589_v12 = vld [vmem:[#allocation1 + $0x237] sm:$0x4]   ;;  %v662_v13 = vld [vmem:[#allocation1 + $0x236] sm:$0x4]  }
   0xd   :  { %167 = vst [vmem:[#allocation1 + $0x2b8] sm:$0x3] %v1741_v11  ;;  %v601_v29 = vld [vmem:[#allocation1 + $0x174] sm:$0x20]   ;;  %v674_v31 = vld [vmem:[#allocation1 + $0x173] sm:$0x20]  }
   0xe   :  { %v585_v14 = vld [vmem:[#allocation1 + $0x138] sm:$0x2]   ;;  %v658_v16 = vld [vmem:[#allocation1 + $0x137] sm:$0x2]   ;;  %263 = vst [vmem:[#allocation1 + $0x1f8] sm:$0x3] %v1765_v18 }
   0xf   :  { %v597_v19 = vld [vmem:[#allocation1 + $0x75] sm:$0x10]   ;;  %v670_v20 = vld [vmem:[#allocation1 + $0x74] sm:$0x10]   ;;  %295 = vst [vmem:[#allocation1 + $0x1b8] sm:$0x3] %v1773_v23 }
  0x10   :  { %v583_v21 = vld [vmem:[#allocation1 + $0x39] sm:$0x1]   ;;  %v656_v22 = vld [vmem:[#allocation1 + $0x38] sm:$0x1]   ;;  %391 = vst [vmem:[#allocation1 + $0xf8] sm:$0x3] %v1797_v26 }
  0x11   :  { %v587_v24 = vsel %vm517_vm0, %v585_v14, %v583_v21  ;;  %v660_v25 = vsel %vm517_vm0, %v658_v16, %v656_v22  ;;  %423 = vst [vmem:[#allocation1 + $0xb8] sm:$0x3] %v1805_v27  ;;  %v682_v39 = vld [vmem:[#allocation1 + $0x371] sm:$0x80]   ;;  %v1718_v42 = vld [vmem:[%s2569_s0 + $0xdc] sm:$0x3] }
  0x12   :  { %v591_v28 = vsel %vm521_vm1, %v589_v12, %v587_v24  ;;  %v664_v30 = vsel %vm521_vm1, %v662_v13, %v660_v25  ;;  %v1726_v43 = vld [vmem:[%s2569_s0 + $0xcc] sm:$0x3]  ;;  %75 = vst [vmem:[#allocation1 + $0x370] sm:$0x3] %v1718_v42  ;;  %v1750_v50 = vld [vmem:[%s2569_s0 + $0x9c] sm:$0x3] }
  0x13   :  { %v595_v32 = vsel %vm525_vm2, %v593_v15, %v591_v28  ;;  %v668_v34 = vsel %vm525_vm2, %v666_v17, %v664_v30  ;;  %107 = vst [vmem:[#allocation1 + $0x330] sm:$0x3] %v1726_v43  ;;  %v1758_v51 = vld [vmem:[%s2569_s0 + $0x8c] sm:$0x3]  ;;  %v629_v53 = vld [vmem:[#allocation1 + $0x3b6] sm:$0x8]  }
  0x14   :  { %v599_v36 = vsel %vm529_vm3, %v597_v19, %v595_v32  ;;  %v672_v38 = vsel %vm529_vm3, %v670_v20, %v668_v34  ;;  %v625_v48 = vld [vmem:[#allocation1 + $0x2b7] sm:$0x4]   ;;  %v698_v49 = vld [vmem:[#allocation1 + $0x2b6] sm:$0x4]   ;;  %203 = vst [vmem:[#allocation1 + $0x270] sm:$0x3] %v1750_v50 }
  0x15   :  { %v603_v40 = vsel %vm533_vm4, %v601_v29, %v599_v36  ;;  %v676_v41 = vsel %vm533_vm4, %v674_v31, %v672_v38  ;;  %v702_v55 = vld [vmem:[#allocation1 + $0x3b5] sm:$0x8]   ;;  %235 = vst [vmem:[#allocation1 + $0x230] sm:$0x3] %v1758_v51  ;;  %v637_v59 = vld [vmem:[#allocation1 + $0x1f4] sm:$0x20]  }
  0x16   :  { %v607_v44 = vsel %vm537_vm5, %v605_v33, %v603_v40  ;;  %v680_v45 = vsel %vm537_vm5, %v678_v35, %v676_v41  ;;  %v621_v52 = vld [vmem:[#allocation1 + $0x1b8] sm:$0x2]   ;;  %v694_v54 = vld [vmem:[#allocation1 + $0x1b7] sm:$0x2]   ;;  %v1782_v61 = vld [vmem:[%s2569_s0 + $0x5c] sm:$0x3] }
  0x17   :  { %v611_v46 = vsel %vm541_vm6, %v609_v37, %v607_v44  ;;  %v684_v47 = vsel %vm541_vm6, %v682_v39, %v680_v45  ;;  %v633_v56 = vld [vmem:[#allocation1 + $0xf5] sm:$0x10]   ;;  %v706_v57 = vld [vmem:[#allocation1 + $0xf4] sm:$0x10]   ;;  %331 = vst [vmem:[#allocation1 + $0x170] sm:$0x3] %v1782_v61 }
  0x18   :  { %612 = vrot.lane.b32.xlu0 %v611_v46, %s1846_s17  ;;  %685 = vrot.lane.b32.xlu1 %v684_v47, %s1847_s18  ;;  %v619_v58 = vld [vmem:[#allocation1 + $0xb9] sm:$0x1]   ;;  %v692_v60 = vld [vmem:[#allocation1 + $0xb8] sm:$0x1]   ;;  %v1790_v1 = vld [vmem:[%s2569_s0 + $0x4c] sm:$0x3] }
  0x19   :  { %v623_v62 = vsel %vm517_vm0, %v621_v52, %v619_v58  ;;  %v641_v63 = vld [vmem:[#allocation1 + $0x2f3] sm:$0x40]   ;;  %v696_v0 = vsel %vm517_vm0, %v694_v54, %v692_v60  ;;  %v1814_v2 = vld [vmem:[%s2569_s0 + $0x1c] sm:$0x3]  ;;  %v710_v6 = vld [vmem:[#allocation1 + $0x1f3] sm:$0x20]  }
  0x1a   :  { %v627_v3 = vsel %vm521_vm1, %v625_v48, %v623_v62  ;;  %v645_v4 = vld [vmem:[#allocation1 + $0x3f2] sm:$0x80]   ;;  %v700_v5 = vsel %vm521_vm1, %v698_v49, %v696_v0  ;;  %363 = vst [vmem:[#allocation1 + $0x130] sm:$0x3] %v1790_v1  ;;  %v1822_v7 = vld [vmem:[%s2569_s0 + $0xc] sm:$0x3] }
  0x1b   :  { %v631_v8 = vsel %vm525_vm2, %v629_v53, %v627_v3  ;;  %v704_v9 = vsel %vm525_vm2, %v702_v55, %v700_v5  ;;  %v714_v10 = vld [vmem:[#allocation1 + $0x2f2] sm:$0x40]   ;;  %459 = vst [vmem:[#allocation1 + $0x70] sm:$0x3] %v1814_v2  ;;  %v1702_v11 = vld [vmem:[%s2569_s0 + $0xfc] sm:$0x3] }
  0x1c   :  { %v635_v12 = vsel %vm529_vm3, %v633_v56, %v631_v8  ;;  %v708_v13 = vsel %vm529_vm3, %v706_v57, %v704_v9  ;;  %v718_v14 = vld [vmem:[#allocation1 + $0x3f1] sm:$0x80]   ;;  %491 = vst [vmem:[#allocation1 + $0x30] sm:$0x3] %v1822_v7  ;;  %v1710_v15 = vld [vmem:[%s2569_s0 + $0xec] sm:$0x3] }
  0x1d   :  { %v639_v16 = vsel %vm533_vm4, %v637_v59, %v635_v12  ;;  %v712_v17 = vsel %vm533_vm4, %v710_v6, %v708_v13  ;;  %11 = vst [vmem:[#allocation1 + $0x3f0] sm:$0x3] %v1702_v11  ;;  %v1734_v18 = vld [vmem:[%s2569_s0 + $0xbc] sm:$0x3]  ;;  %v1742_v21 = vld [vmem:[%s2569_s0 + $0xac] sm:$0x3] }
  0x1e   :  { %v643_v19 = vsel %vm537_vm5, %v641_v63, %v639_v16  ;;  %v716_v20 = vsel %vm537_vm5, %v714_v10, %v712_v17  ;;  %43 = vst [vmem:[#allocation1 + $0x3b0] sm:$0x3] %v1710_v15  ;;  %v1766_v24 = vld [vmem:[%s2569_s0 + $0x7c] sm:$0x3]  ;;  %v1774_v25 = vld [vmem:[%s2569_s0 + $0x6c] sm:$0x3] }
  0x1f   :  { %v647_v22 = vsel %vm541_vm6, %v645_v4, %v643_v19  ;;  %v720_v23 = vsel %vm541_vm6, %v718_v14, %v716_v20  ;;  %139 = vst [vmem:[#allocation1 + $0x2f0] sm:$0x3] %v1734_v18  ;;  %v1798_v26 = vld [vmem:[%s2569_s0 + $0x3c] sm:$0x3]  ;;  %v812_v28 = vld [vmem:[#allocation1 + $0x32d] sm:$0x8]  }
  0x20   :  { %648 = vrot.lane.b32.xlu0 %v647_v22, %s1846_s17  ;;  %721 = vrot.lane.b32.xlu1 %v720_v23, %s1847_s18  ;;  %171 = vst [vmem:[#allocation1 + $0x2b0] sm:$0x3] %v1742_v21  ;;  %v1806_v29 = vld [vmem:[%s2569_s0 + $0x2c] sm:$0x3]  ;;  %v808_v30 = vld [vmem:[#allocation1 + $0x22e] sm:$0x4]  }
  0x21   :  { %v804_v27 = vld [vmem:[#allocation1 + $0x12f] sm:$0x2]   ;;  %267 = vst [vmem:[#allocation1 + $0x1f0] sm:$0x3] %v1766_v24  ;;  %v1703_v31 = vld [vmem:[%s2569_s0 + $0xfa] sm:$0x3] }
  0x22   :  { %299 = vst [vmem:[#allocation1 + $0x1b0] sm:$0x3] %v1774_v25  ;;  %v1711_v33 = vld [vmem:[%s2569_s0 + $0xea] sm:$0x3]  ;;  %v816_v35 = vld [vmem:[#allocation1 + $0x6c] sm:$0x10]  }
  0x23   :  { %v802_v32 = vld [vmem:[#allocation1 + $0x30] sm:$0x1]   ;;  %395 = vst [vmem:[#allocation1 + $0xf0] sm:$0x3] %v1798_v26  ;;  %v1735_v36 = vld [vmem:[%s2569_s0 + $0xba] sm:$0x3] }
  0x24   :  { %v806_v34 = vsel %vm517_vm0, %v804_v27, %v802_v32  ;;  %427 = vst [vmem:[#allocation1 + $0xb0] sm:$0x3] %v1806_v29  ;;  %v820_v38 = vld [vmem:[#allocation1 + $0x16b] sm:$0x20]   ;;  %v1743_v39 = vld [vmem:[%s2569_s0 + $0xaa] sm:$0x3] }
  0x25   :  { %v810_v37 = vsel %vm521_vm1, %v808_v30, %v806_v34  ;;  %15 = vst [vmem:[#allocation1 + $0x3e8] sm:$0x3] %v1703_v31  ;;  %v824_v41 = vld [vmem:[#allocation1 + $0x26a] sm:$0x40]   ;;  %v1767_v42 = vld [vmem:[%s2569_s0 + $0x7a] sm:$0x3] }
  0x26   :  { %v814_v40 = vsel %vm525_vm2, %v812_v28, %v810_v37  ;;  %47 = vst [vmem:[#allocation1 + $0x3a8] sm:$0x3] %v1711_v33  ;;  %v828_v44 = vld [vmem:[#allocation1 + $0x369] sm:$0x80]   ;;  %v1775_v45 = vld [vmem:[%s2569_s0 + $0x6a] sm:$0x3] }
  0x27   :  { %v818_v43 = vsel %vm529_vm3, %v816_v35, %v814_v40  ;;  %143 = vst [vmem:[#allocation1 + $0x2e8] sm:$0x3] %v1735_v36  ;;  %v1799_v47 = vld [vmem:[%s2569_s0 + $0x3a] sm:$0x3]  ;;  %v848_v50 = vld [vmem:[#allocation1 + $0x3ad] sm:$0x8]  }
  0x28   :  { %v822_v46 = vsel %vm533_vm4, %v820_v38, %v818_v43  ;;  %175 = vst [vmem:[#allocation1 + $0x2a8] sm:$0x3] %v1743_v39  ;;  %v1807_v51 = vld [vmem:[%s2569_s0 + $0x2a] sm:$0x3]  ;;  %v844_v53 = vld [vmem:[#allocation1 + $0x2ae] sm:$0x4]  }
  0x29   :  { %v826_v48 = vsel %vm537_vm5, %v824_v41, %v822_v46  ;;  %v840_v49 = vld [vmem:[#allocation1 + $0x1af] sm:$0x2]   ;;  %271 = vst [vmem:[#allocation1 + $0x1e8] sm:$0x3] %v1767_v42  ;;  %v729_v54 = vld [vmem:[#allocation1 + $0x31] sm:$0x1]  }
  0x2a   :  { %v830_v52 = vsel %vm541_vm6, %v828_v44, %v826_v48  ;;  %303 = vst [vmem:[#allocation1 + $0x1a8] sm:$0x3] %v1775_v45  ;;  %v731_v56 = vld [vmem:[#allocation1 + $0x130] sm:$0x2]   ;;  %v852_v58 = vld [vmem:[#allocation1 + $0xec] sm:$0x10]  }
  0x2b   :  { %831 = vrot.lane.b32.xlu0 %v830_v52, %s1848_s30  ;;  %v838_v55 = vld [vmem:[#allocation1 + $0xb0] sm:$0x1]   ;;  %399 = vst [vmem:[#allocation1 + $0xe8] sm:$0x3] %v1799_v47  ;;  %v733_v59 = vsel %vm517_vm0, %v731_v56, %v729_v54  ;;  %v735_v60 = vld [vmem:[#allocation1 + $0x22f] sm:$0x4]  }
  0x2c   :  { %v842_v57 = vsel %vm517_vm0, %v840_v49, %v838_v55  ;;  %431 = vst [vmem:[#allocation1 + $0xa8] sm:$0x3] %v1807_v51  ;;  %v856_v62 = vld [vmem:[#allocation1 + $0x1eb] sm:$0x20]   ;;  %v737_v63 = vsel %vm521_vm1, %v735_v60, %v733_v59  ;;  %v739_v0 = vld [vmem:[#allocation1 + $0x32e] sm:$0x8]  }
  0x2d   :  { %v846_v61 = vsel %vm521_vm1, %v844_v53, %v842_v57  ;;  %v743_v1 = vld [vmem:[#allocation1 + $0x6d] sm:$0x10]   ;;  %v860_v3 = vld [vmem:[#allocation1 + $0x2ea] sm:$0x40]   ;;  %v741_v4 = vsel %vm525_vm2, %v739_v0, %v737_v63  ;;  %v1719_v14 = vld [vmem:[%s2569_s0 + $0xda] sm:$0x3] }
  0x2e   :  { %v850_v2 = vsel %vm525_vm2, %v848_v50, %v846_v61  ;;  %v747_v5 = vld [vmem:[#allocation1 + $0x16c] sm:$0x20]   ;;  %v864_v8 = vld [vmem:[#allocation1 + $0x3e9] sm:$0x80]   ;;  %v745_v9 = vsel %vm529_vm3, %v743_v1, %v741_v4  ;;  %v1727_v15 = vld [vmem:[%s2569_s0 + $0xca] sm:$0x3] }
  0x2f   :  { %v751_v6 = vld [vmem:[#allocation1 + $0x26b] sm:$0x40]   ;;  %v854_v7 = vsel %vm529_vm3, %v852_v58, %v850_v2  ;;  %v917_v12 = vld [vmem:[#allocation1 + $0x2a7] sm:$0x4]   ;;  %v749_v13 = vsel %vm533_vm4, %v747_v5, %v745_v9  ;;  %79 = vst [vmem:[#allocation1 + $0x368] sm:$0x3] %v1719_v14 }
  0x30   :  { %v755_v10 = vld [vmem:[#allocation1 + $0x36a] sm:$0x80]   ;;  %v858_v11 = vsel %vm533_vm4, %v856_v62, %v854_v7  ;;  %v921_v18 = vld [vmem:[#allocation1 + $0x3a6] sm:$0x8]   ;;  %v753_v19 = vsel %vm537_vm5, %v751_v6, %v749_v13  ;;  %v1751_v20 = vld [vmem:[%s2569_s0 + $0x9a] sm:$0x3] }
  0x31   :  { %v862_v16 = vsel %vm537_vm5, %v860_v3, %v858_v11  ;;  %v913_v17 = vld [vmem:[#allocation1 + $0x1a8] sm:$0x2]   ;;  %v757_v23 = vsel %vm541_vm6, %v755_v10, %v753_v19  ;;  %111 = vst [vmem:[#allocation1 + $0x328] sm:$0x3] %v1727_v15  ;;  %v1759_v24 = vld [vmem:[%s2569_s0 + $0x8a] sm:$0x3] }
  0x32   :  { %v866_v21 = vsel %vm541_vm6, %v864_v8, %v862_v16  ;;  %v925_v22 = vld [vmem:[#allocation1 + $0xe5] sm:$0x10]   ;;  %s1849_s10 = smov 104   ;;  %207 = vst [vmem:[#allocation1 + $0x268] sm:$0x3] %v1751_v20  ;;  %s1850_s29 = smov 88  }
  0x33   :  { %867 = vrot.lane.b32.xlu1 %v866_v21, %s1848_s30  ;;  %v911_v25 = vld [vmem:[#allocation1 + $0xa9] sm:$0x1]   ;;  %758 = vrot.lane.b32.xlu2 %v757_v23, %s1849_s10  ;;  %v1783_v26 = vld [vmem:[%s2569_s0 + $0x5a] sm:$0x3]  ;;  %239 = vst [vmem:[#allocation1 + $0x228] sm:$0x3] %v1759_v24 }
  0x34   :  { %v915_v27 = vsel %vm517_vm0, %v913_v17, %v911_v25  ;;  %v1791_v28 = vld [vmem:[%s2569_s0 + $0x4a] sm:$0x3]  ;;  %v1815_v29 = vld [vmem:[%s2569_s0 + $0x1a] sm:$0x3]  ;;  %v929_v31 = vld [vmem:[#allocation1 + $0x1e4] sm:$0x20]  }
  0x35   :  { %v919_v30 = vsel %vm521_vm1, %v917_v12, %v915_v27  ;;  %335 = vst [vmem:[#allocation1 + $0x168] sm:$0x3] %v1783_v26  ;;  %v1823_v32 = vld [vmem:[%s2569_s0 + $0xa] sm:$0x3]  ;;  %v933_v34 = vld [vmem:[#allocation1 + $0x2e3] sm:$0x40]  }
  0x36   :  { %v923_v33 = vsel %vm525_vm2, %v921_v18, %v919_v30  ;;  %367 = vst [vmem:[#allocation1 + $0x128] sm:$0x3] %v1791_v28  ;;  %v1720_v35 = vld [vmem:[%s2569_s0 + $0xd8] sm:$0x3]  ;;  %v937_v37 = vld [vmem:[#allocation1 + $0x3e2] sm:$0x80]  }
  0x37   :  { %v927_v36 = vsel %vm529_vm3, %v925_v22, %v923_v33  ;;  %463 = vst [vmem:[#allocation1 + $0x68] sm:$0x3] %v1815_v29  ;;  %v1728_v38 = vld [vmem:[%s2569_s0 + $0xc8] sm:$0x3]  ;;  %v1752_v40 = vld [vmem:[%s2569_s0 + $0x98] sm:$0x3] }
  0x38   :  { %v931_v39 = vsel %vm533_vm4, %v929_v31, %v927_v36  ;;  %495 = vst [vmem:[#allocation1 + $0x28] sm:$0x3] %v1823_v32  ;;  %v1760_v42 = vld [vmem:[%s2569_s0 + $0x88] sm:$0x3]  ;;  %v1784_v44 = vld [vmem:[%s2569_s0 + $0x58] sm:$0x3] }
  0x39   :  { %v935_v41 = vsel %vm537_vm5, %v933_v34, %v931_v39  ;;  %83 = vst [vmem:[#allocation1 + $0x360] sm:$0x3] %v1720_v35  ;;  %v1792_v45 = vld [vmem:[%s2569_s0 + $0x48] sm:$0x3]  ;;  %v1816_v46 = vld [vmem:[%s2569_s0 + $0x18] sm:$0x3] }
  0x3a   :  { %v939_v43 = vsel %vm541_vm6, %v937_v37, %v935_v41  ;;  %115 = vst [vmem:[#allocation1 + $0x320] sm:$0x3] %v1728_v38  ;;  %v1824_v47 = vld [vmem:[%s2569_s0 + $0x8] sm:$0x3]  ;;  %v765_v48 = vld [vmem:[#allocation1 + $0xb1] sm:$0x1]  }
  0x3b   :  { %940 = vrot.lane.b32.xlu0 %v939_v43, %s1850_s29  ;;  %211 = vst [vmem:[#allocation1 + $0x260] sm:$0x3] %v1752_v40  ;;  %v958_v50 = vld [vmem:[#allocation1 + $0x325] sm:$0x8]   ;;  %v767_v51 = vld [vmem:[#allocation1 + $0x1b0] sm:$0x2]  }
  0x3c   :  { %243 = vst [vmem:[#allocation1 + $0x220] sm:$0x3] %v1760_v42  ;;  %v954_v52 = vld [vmem:[#allocation1 + $0x226] sm:$0x4]   ;;  %v769_v53 = vsel %vm517_vm0, %v767_v51, %v765_v48  ;;  %v771_v54 = vld [vmem:[#allocation1 + $0x2af] sm:$0x4]  }
  0x3d   :  { %v950_v49 = vld [vmem:[#allocation1 + $0x127] sm:$0x2]   ;;  %339 = vst [vmem:[#allocation1 + $0x160] sm:$0x3] %v1784_v44  ;;  %v773_v56 = vsel %vm521_vm1, %v771_v54, %v769_v53  ;;  %v775_v57 = vld [vmem:[#allocation1 + $0x3ae] sm:$0x8]  }
  0x3e   :  { %371 = vst [vmem:[#allocation1 + $0x120] sm:$0x3] %v1792_v45  ;;  %v962_v59 = vld [vmem:[#allocation1 + $0x64] sm:$0x10]   ;;  %v777_v60 = vsel %vm525_vm2, %v775_v57, %v773_v56  ;;  %v779_v61 = vld [vmem:[#allocation1 + $0xed] sm:$0x10]  }
  0x3f   :  { %v948_v55 = vld [vmem:[#allocation1 + $0x28] sm:$0x1]   ;;  %467 = vst [vmem:[#allocation1 + $0x60] sm:$0x3] %v1816_v46  ;;  %v781_v0 = vsel %vm529_vm3, %v779_v61, %v777_v60  ;;  %v783_v1 = vld [vmem:[#allocation1 + $0x1ec] sm:$0x20]  }
  0x40   :  { %v952_v58 = vsel %vm517_vm0, %v950_v49, %v948_v55  ;;  %499 = vst [vmem:[#allocation1 + $0x20] sm:$0x3] %v1824_v47  ;;  %v966_v63 = vld [vmem:[#allocation1 + $0x163] sm:$0x20]   ;;  %v787_v2 = vld [vmem:[#allocation1 + $0x2eb] sm:$0x40]   ;;  %v785_v5 = vsel %vm533_vm4, %v783_v1, %v781_v0 }
  0x41   :  { %v956_v62 = vsel %vm521_vm1, %v954_v52, %v952_v58  ;;  %v970_v4 = vld [vmem:[#allocation1 + $0x262] sm:$0x40]   ;;  %v791_v6 = vld [vmem:[#allocation1 + $0x3ea] sm:$0x80]   ;;  %v1704_v7 = vld [vmem:[%s2569_s0 + $0xf8] sm:$0x3]  ;;  %v789_v10 = vsel %vm537_vm5, %v787_v2, %v785_v5 }
  0x42   :  { %v960_v3 = vsel %vm525_vm2, %v958_v50, %v956_v62  ;;  %v974_v9 = vld [vmem:[#allocation1 + $0x361] sm:$0x80]   ;;  %19 = vst [vmem:[#allocation1 + $0x3e0] sm:$0x3] %v1704_v7  ;;  %v793_v14 = vsel %vm541_vm6, %v791_v6, %v789_v10  ;;  %v1736_v15 = vld [vmem:[%s2569_s0 + $0xb8] sm:$0x3] }
  0x43   :  { %v964_v8 = vsel %vm529_vm3, %v962_v59, %v960_v3  ;;  %v1712_v11 = vld [vmem:[%s2569_s0 + $0xe8] sm:$0x3]  ;;  %v1027_v13 = vld [vmem:[#allocation1 + $0x21f] sm:$0x4]   ;;  %794 = vrot.lane.b32.xlu2 %v793_v14, %s1849_s10  ;;  %147 = vst [vmem:[#allocation1 + $0x2e0] sm:$0x3] %v1736_v15 }
  0x44   :  { %v968_v12 = vsel %vm533_vm4, %v966_v63, %v964_v8  ;;  %51 = vst [vmem:[#allocation1 + $0x3a0] sm:$0x3] %v1712_v11  ;;  %v1031_v18 = vld [vmem:[#allocation1 + $0x31e] sm:$0x8]   ;;  %v1744_v19 = vld [vmem:[%s2569_s0 + $0xa8] sm:$0x3] }
  0x45   :  { %v972_v16 = vsel %vm537_vm5, %v970_v4, %v968_v12  ;;  %v1023_v17 = vld [vmem:[#allocation1 + $0x120] sm:$0x2]   ;;  %179 = vst [vmem:[#allocation1 + $0x2a0] sm:$0x3] %v1744_v19  ;;  %v1768_v22 = vld [vmem:[%s2569_s0 + $0x78] sm:$0x3] }
  0x46   :  { %v976_v20 = vsel %vm541_vm6, %v974_v9, %v972_v16  ;;  %v1035_v21 = vld [vmem:[#allocation1 + $0x5d] sm:$0x10]   ;;  %s1851_s17 = smov 80   ;;  %275 = vst [vmem:[#allocation1 + $0x1e0] sm:$0x3] %v1768_v22  ;;  %s1852_s24 = smov 72  }
  0x47   :  { %977 = vrot.lane.b32.xlu1 %v976_v20, %s1851_s17  ;;  %v1021_v23 = vld [vmem:[#allocation1 + $0x21] sm:$0x1]   ;;  %v1776_v25 = vld [vmem:[%s2569_s0 + $0x68] sm:$0x3]  ;;  %v1800_v27 = vld [vmem:[%s2569_s0 + $0x38] sm:$0x3] }
  0x48   :  { %v1039_v24 = vld [vmem:[#allocation1 + $0x15c] sm:$0x20]   ;;  %v1025_v26 = vsel %vm517_vm0, %v1023_v17, %v1021_v23  ;;  %307 = vst [vmem:[#allocation1 + $0x1a0] sm:$0x3] %v1776_v25  ;;  %v1808_v28 = vld [vmem:[%s2569_s0 + $0x28] sm:$0x3] }
  0x49   :  { %v1029_v29 = vsel %vm521_vm1, %v1027_v13, %v1025_v26  ;;  %403 = vst [vmem:[#allocation1 + $0xe0] sm:$0x3] %v1800_v27  ;;  %v875_v30 = vld [vmem:[#allocation1 + $0x29] sm:$0x1]   ;;  %v1043_v33 = vld [vmem:[#allocation1 + $0x25b] sm:$0x40]  }
  0x4a   :  { %v877_v31 = vld [vmem:[#allocation1 + $0x128] sm:$0x2]   ;;  %v1033_v32 = vsel %vm525_vm2, %v1031_v18, %v1029_v29  ;;  %435 = vst [vmem:[#allocation1 + $0xa0] sm:$0x3] %v1808_v28  ;;  %v1047_v36 = vld [vmem:[#allocation1 + $0x35a] sm:$0x80]  }
  0x4b   :  { %v879_v34 = vsel %vm517_vm0, %v877_v31, %v875_v30  ;;  %v1037_v35 = vsel %vm529_vm3, %v1035_v21, %v1033_v32  ;;  %v881_v37 = vld [vmem:[#allocation1 + $0x227] sm:$0x4]   ;;  %v1067_v50 = vld [vmem:[#allocation1 + $0x39e] sm:$0x8]   ;;  %v1140_v52 = vld [vmem:[#allocation1 + $0x39d] sm:$0x8]  }
  0x4c   :  { %v1041_v38 = vsel %vm533_vm4, %v1039_v24, %v1037_v35  ;;  %v883_v39 = vsel %vm521_vm1, %v881_v37, %v879_v34  ;;  %v885_v40 = vld [vmem:[#allocation1 + $0x326] sm:$0x8]   ;;  %v1063_v45 = vld [vmem:[#allocation1 + $0x29f] sm:$0x4]   ;;  %v1136_v46 = vld [vmem:[#allocation1 + $0x29e] sm:$0x4]  }
  0x4d   :  { %v1045_v41 = vsel %vm537_vm5, %v1043_v33, %v1041_v38  ;;  %v887_v42 = vsel %vm525_vm2, %v885_v40, %v883_v39  ;;  %v889_v43 = vld [vmem:[#allocation1 + $0x65] sm:$0x10]   ;;  %v1075_v60 = vld [vmem:[#allocation1 + $0x1dc] sm:$0x20]   ;;  %v1148_v62 = vld [vmem:[#allocation1 + $0x1db] sm:$0x20]  }
  0x4e   :  { %v1049_v44 = vsel %vm541_vm6, %v1047_v36, %v1045_v41  ;;  %v891_v47 = vsel %vm529_vm3, %v889_v43, %v887_v42  ;;  %v893_v48 = vld [vmem:[#allocation1 + $0x164] sm:$0x20]   ;;  %v1721_v0 = vld [vmem:[%s2569_s0 + $0xd6] sm:$0x3]  ;;  %v1079_v2 = vld [vmem:[#allocation1 + $0x2db] sm:$0x40]  }
  0x4f   :  { %1050 = vrot.lane.b32.xlu0 %v1049_v44, %s1852_s24  ;;  %v1059_v49 = vld [vmem:[#allocation1 + $0x1a0] sm:$0x2]   ;;  %v1132_v51 = vld [vmem:[#allocation1 + $0x19f] sm:$0x2]   ;;  %v895_v53 = vsel %vm533_vm4, %v893_v48, %v891_v47  ;;  %v897_v54 = vld [vmem:[#allocation1 + $0x263] sm:$0x40]  }
  0x50   :  { %v1071_v55 = vld [vmem:[#allocation1 + $0xdd] sm:$0x10]   ;;  %v1144_v56 = vld [vmem:[#allocation1 + $0xdc] sm:$0x10]   ;;  %v899_v57 = vsel %vm537_vm5, %v897_v54, %v895_v53  ;;  %v901_v58 = vld [vmem:[#allocation1 + $0x362] sm:$0x80]  }
  0x51   :  { %v1057_v59 = vld [vmem:[#allocation1 + $0xa1] sm:$0x1]   ;;  %v1130_v61 = vld [vmem:[#allocation1 + $0xa0] sm:$0x1]   ;;  %v903_v63 = vsel %vm541_vm6, %v901_v58, %v899_v57  ;;  %87 = vst [vmem:[#allocation1 + $0x358] sm:$0x3] %v1721_v0 }
  0x52   :  { %v1061_v1 = vsel %vm517_vm0, %v1059_v49, %v1057_v59  ;;  %v1134_v3 = vsel %vm517_vm0, %v1132_v51, %v1130_v61  ;;  %904 = vrot.lane.b32.xlu2 %v903_v63, %s1850_s29  ;;  %v1729_v4 = vld [vmem:[%s2569_s0 + $0xc6] sm:$0x3]  ;;  %v1753_v5 = vld [vmem:[%s2569_s0 + $0x96] sm:$0x3]  ;;  %v1083_v7 = vld [vmem:[#allocation1 + $0x3da] sm:$0x80]  }
  0x53   :  { %v1065_v6 = vsel %vm521_vm1, %v1063_v45, %v1061_v1  ;;  %v1138_v8 = vsel %vm521_vm1, %v1136_v46, %v1134_v3  ;;  %v1156_v9 = vld [vmem:[#allocation1 + $0x3d9] sm:$0x80]   ;;  %119 = vst [vmem:[#allocation1 + $0x318] sm:$0x3] %v1729_v4  ;;  %v1761_v10 = vld [vmem:[%s2569_s0 + $0x86] sm:$0x3] }
  0x54   :  { %v1785_v11 = vld [vmem:[%s2569_s0 + $0x56] sm:$0x3]  ;;  %v1069_v12 = vsel %vm525_vm2, %v1067_v50, %v1065_v6  ;;  %v1142_v13 = vsel %vm525_vm2, %v1140_v52, %v1138_v8  ;;  %v1152_v14 = vld [vmem:[#allocation1 + $0x2da] sm:$0x40]   ;;  %215 = vst [vmem:[#allocation1 + $0x258] sm:$0x3] %v1753_v5 }
  0x55   :  { %v1793_v15 = vld [vmem:[%s2569_s0 + $0x46] sm:$0x3]  ;;  %v1073_v16 = vsel %vm529_vm3, %v1071_v55, %v1069_v12  ;;  %v1146_v17 = vsel %vm529_vm3, %v1144_v56, %v1142_v13  ;;  %247 = vst [vmem:[#allocation1 + $0x218] sm:$0x3] %v1761_v10  ;;  %v1817_v18 = vld [vmem:[%s2569_s0 + $0x16] sm:$0x3] }
  0x56   :  { %v1825_v19 = vld [vmem:[%s2569_s0 + $0x6] sm:$0x3]  ;;  %v1077_v20 = vsel %vm533_vm4, %v1075_v60, %v1073_v16  ;;  %v1150_v21 = vsel %vm533_vm4, %v1148_v62, %v1146_v17  ;;  %343 = vst [vmem:[#allocation1 + $0x158] sm:$0x3] %v1785_v11  ;;  %v984_v22 = vld [vmem:[#allocation1 + $0xa8] sm:$0x1]  }
  0x57   :  { %v986_v23 = vld [vmem:[#allocation1 + $0x1a7] sm:$0x2]   ;;  %v1081_v24 = vsel %vm537_vm5, %v1079_v2, %v1077_v20  ;;  %v1154_v25 = vsel %vm537_vm5, %v1152_v14, %v1150_v21  ;;  %375 = vst [vmem:[#allocation1 + $0x118] sm:$0x3] %v1793_v15  ;;  %s1853_s13 = smov 64   ;;  %s1854_s8 = smov 56  }
  0x58   :  { %v988_v26 = vsel %vm517_vm0, %v986_v23, %v984_v22  ;;  %v990_v27 = vld [vmem:[#allocation1 + $0x2a6] sm:$0x4]   ;;  %v1085_v29 = vsel %vm541_vm6, %v1083_v7, %v1081_v24  ;;  %v1158_v30 = vsel %vm541_vm6, %v1156_v9, %v1154_v25  ;;  %471 = vst [vmem:[#allocation1 + $0x58] sm:$0x3] %v1817_v18  ;;  %v1705_v40 = vld [vmem:[%s2569_s0 + $0xf6] sm:$0x3] }
  0x59   :  { %v994_v28 = vld [vmem:[#allocation1 + $0x3a5] sm:$0x8]   ;;  %v992_v31 = vsel %vm521_vm1, %v990_v27, %v988_v26  ;;  %1086 = vrot.lane.b32.xlu1 %v1085_v29, %s1852_s24  ;;  %1159 = vrot.lane.b32.xlu0 %v1158_v30, %s1853_s13  ;;  %503 = vst [vmem:[#allocation1 + $0x18] sm:$0x3] %v1825_v19  ;;  %v1713_v48 = vld [vmem:[%s2569_s0 + $0xe6] sm:$0x3] }
  0x5a   :  { %v998_v32 = vld [vmem:[#allocation1 + $0xe4] sm:$0x10]   ;;  %v996_v34 = vsel %vm525_vm2, %v994_v28, %v992_v31  ;;  %23 = vst [vmem:[#allocation1 + $0x3d8] sm:$0x3] %v1705_v40  ;;  %v1177_v45 = vld [vmem:[#allocation1 + $0x316] sm:$0x8]  }
  0x5b   :  { %v1002_v33 = vld [vmem:[#allocation1 + $0x1e3] sm:$0x20]   ;;  %v1000_v35 = vsel %vm529_vm3, %v998_v32, %v996_v34  ;;  %v1250_v47 = vld [vmem:[#allocation1 + $0x315] sm:$0x8]   ;;  %55 = vst [vmem:[#allocation1 + $0x398] sm:$0x3] %v1713_v48 }
  0x5c   :  { %v1006_v36 = vld [vmem:[#allocation1 + $0x2e2] sm:$0x40]   ;;  %v1004_v37 = vsel %vm533_vm4, %v1002_v33, %v1000_v35  ;;  %v1173_v41 = vld [vmem:[#allocation1 + $0x217] sm:$0x4]   ;;  %v1246_v42 = vld [vmem:[#allocation1 + $0x216] sm:$0x4]  }
  0x5d   :  { %v1010_v38 = vld [vmem:[#allocation1 + $0x3e1] sm:$0x80]   ;;  %v1008_v39 = vsel %vm537_vm5, %v1006_v36, %v1004_v37  ;;  %v1185_v52 = vld [vmem:[#allocation1 + $0x154] sm:$0x20]   ;;  %v1258_v54 = vld [vmem:[#allocation1 + $0x153] sm:$0x20]  }
  0x5e   :  { %v1012_v43 = vsel %vm541_vm6, %v1010_v38, %v1008_v39  ;;  %v1169_v44 = vld [vmem:[#allocation1 + $0x118] sm:$0x2]   ;;  %v1242_v46 = vld [vmem:[#allocation1 + $0x117] sm:$0x2]   ;;  %v1737_v55 = vld [vmem:[%s2569_s0 + $0xb6] sm:$0x3] }
  0x5f   :  { %1013 = vrot.lane.b32.xlu2 %v1012_v43, %s1851_s17  ;;  %v1181_v49 = vld [vmem:[#allocation1 + $0x55] sm:$0x10]   ;;  %v1254_v50 = vld [vmem:[#allocation1 + $0x54] sm:$0x10]   ;;  %151 = vst [vmem:[#allocation1 + $0x2d8] sm:$0x3] %v1737_v55 }
  0x60   :  { %v1167_v51 = vld [vmem:[#allocation1 + $0x19] sm:$0x1]   ;;  %v1240_v53 = vld [vmem:[#allocation1 + $0x18] sm:$0x1]   ;;  %v1745_v59 = vld [vmem:[%s2569_s0 + $0xa6] sm:$0x3] }
  0x61   :  { %v1171_v56 = vsel %vm517_vm0, %v1169_v44, %v1167_v51  ;;  %v1189_v57 = vld [vmem:[#allocation1 + $0x253] sm:$0x40]   ;;  %v1244_v58 = vsel %vm517_vm0, %v1242_v46, %v1240_v53  ;;  %v1769_v60 = vld [vmem:[%s2569_s0 + $0x76] sm:$0x3]  ;;  %183 = vst [vmem:[#allocation1 + $0x298] sm:$0x3] %v1745_v59 }
  0x62   :  { %v1175_v61 = vsel %vm521_vm1, %v1173_v41, %v1171_v56  ;;  %v1193_v62 = vld [vmem:[#allocation1 + $0x352] sm:$0x80]   ;;  %v1248_v63 = vsel %vm521_vm1, %v1246_v42, %v1244_v58  ;;  %v1777_v0 = vld [vmem:[%s2569_s0 + $0x66] sm:$0x3]  ;;  %v1801_v1 = vld [vmem:[%s2569_s0 + $0x36] sm:$0x3] }
  0x63   :  { %v1179_v2 = vsel %vm525_vm2, %v1177_v45, %v1175_v61  ;;  %v1252_v3 = vsel %vm525_vm2, %v1250_v47, %v1248_v63  ;;  %v1262_v4 = vld [vmem:[#allocation1 + $0x252] sm:$0x40]   ;;  %279 = vst [vmem:[#allocation1 + $0x1d8] sm:$0x3] %v1769_v60  ;;  %v1809_v5 = vld [vmem:[%s2569_s0 + $0x26] sm:$0x3] }
  0x64   :  { %v1183_v6 = vsel %vm529_vm3, %v1181_v49, %v1179_v2  ;;  %v1256_v7 = vsel %vm529_vm3, %v1254_v50, %v1252_v3  ;;  %v1266_v8 = vld [vmem:[#allocation1 + $0x351] sm:$0x80]   ;;  %311 = vst [vmem:[#allocation1 + $0x198] sm:$0x3] %v1777_v0  ;;  %v1706_v9 = vld [vmem:[%s2569_s0 + $0xf4] sm:$0x3] }
  0x65   :  { %v1187_v10 = vsel %vm533_vm4, %v1185_v52, %v1183_v6  ;;  %v1260_v11 = vsel %vm533_vm4, %v1258_v54, %v1256_v7  ;;  %407 = vst [vmem:[#allocation1 + $0xd8] sm:$0x3] %v1801_v1  ;;  %v1714_v12 = vld [vmem:[%s2569_s0 + $0xe4] sm:$0x3]  ;;  %v1738_v15 = vld [vmem:[%s2569_s0 + $0xb4] sm:$0x3] }
  0x66   :  { %v1191_v13 = vsel %vm537_vm5, %v1189_v57, %v1187_v10  ;;  %v1264_v14 = vsel %vm537_vm5, %v1262_v4, %v1260_v11  ;;  %439 = vst [vmem:[#allocation1 + $0x98] sm:$0x3] %v1809_v5  ;;  %v1746_v18 = vld [vmem:[%s2569_s0 + $0xa4] sm:$0x3]  ;;  %s1855_s9 = smov 48   ;;  %s1856_s21 = smov 40  }
  0x67   :  { %v1195_v16 = vsel %vm541_vm6, %v1193_v62, %v1191_v13  ;;  %v1268_v17 = vsel %vm541_vm6, %v1266_v8, %v1264_v14  ;;  %27 = vst [vmem:[#allocation1 + $0x3d0] sm:$0x3] %v1706_v9  ;;  %v1770_v19 = vld [vmem:[%s2569_s0 + $0x74] sm:$0x3]  ;;  %v1778_v20 = vld [vmem:[%s2569_s0 + $0x64] sm:$0x3] }
  0x68   :  { %1196 = vrot.lane.b32.xlu1 %v1195_v16, %s1854_s8  ;;  %1269 = vrot.lane.b32.xlu0 %v1268_v17, %s1855_s9  ;;  %59 = vst [vmem:[#allocation1 + $0x390] sm:$0x3] %v1714_v12  ;;  %v1802_v21 = vld [vmem:[%s2569_s0 + $0x34] sm:$0x3]  ;;  %v1810_v22 = vld [vmem:[%s2569_s0 + $0x24] sm:$0x3] }
  0x69   :  { %155 = vst [vmem:[#allocation1 + $0x2d0] sm:$0x3] %v1738_v15  ;;  %v1094_v23 = vld [vmem:[#allocation1 + $0x20] sm:$0x1]   ;;  %v1286_v25 = vld [vmem:[#allocation1 + $0x395] sm:$0x8]  }
  0x6a   :  { %187 = vst [vmem:[#allocation1 + $0x290] sm:$0x3] %v1746_v18  ;;  %v1096_v26 = vld [vmem:[#allocation1 + $0x11f] sm:$0x2]   ;;  %v1282_v27 = vld [vmem:[#allocation1 + $0x296] sm:$0x4]  }
  0x6b   :  { %v1278_v24 = vld [vmem:[#allocation1 + $0x197] sm:$0x2]   ;;  %283 = vst [vmem:[#allocation1 + $0x1d0] sm:$0x3] %v1770_v19  ;;  %v1098_v28 = vsel %vm517_vm0, %v1096_v26, %v1094_v23  ;;  %v1100_v29 = vld [vmem:[#allocation1 + $0x21e] sm:$0x4]  }
  0x6c   :  { %315 = vst [vmem:[#allocation1 + $0x190] sm:$0x3] %v1778_v20  ;;  %v1102_v31 = vsel %vm521_vm1, %v1100_v29, %v1098_v28  ;;  %v1104_v32 = vld [vmem:[#allocation1 + $0x31d] sm:$0x8]   ;;  %v1290_v34 = vld [vmem:[#allocation1 + $0xd4] sm:$0x10]  }
  0x6d   :  { %v1276_v30 = vld [vmem:[#allocation1 + $0x98] sm:$0x1]   ;;  %411 = vst [vmem:[#allocation1 + $0xd0] sm:$0x3] %v1802_v21  ;;  %v1106_v35 = vsel %vm525_vm2, %v1104_v32, %v1102_v31  ;;  %v1108_v36 = vld [vmem:[#allocation1 + $0x5c] sm:$0x10]  }
  0x6e   :  { %v1280_v33 = vsel %vm517_vm0, %v1278_v24, %v1276_v30  ;;  %443 = vst [vmem:[#allocation1 + $0x90] sm:$0x3] %v1810_v22  ;;  %v1294_v38 = vld [vmem:[#allocation1 + $0x1d3] sm:$0x20]   ;;  %v1110_v39 = vsel %vm529_vm3, %v1108_v36, %v1106_v35  ;;  %v1112_v40 = vld [vmem:[#allocation1 + $0x15b] sm:$0x20]  }
  0x6f   :  { %v1284_v37 = vsel %vm521_vm1, %v1282_v27, %v1280_v33  ;;  %v1116_v41 = vld [vmem:[#allocation1 + $0x25a] sm:$0x40]   ;;  %v1298_v43 = vld [vmem:[#allocation1 + $0x2d2] sm:$0x40]   ;;  %v1114_v44 = vsel %vm533_vm4, %v1112_v40, %v1110_v39  ;;  %v1722_v46 = vld [vmem:[%s2569_s0 + $0xd4] sm:$0x3] }
  0x70   :  { %v1288_v42 = vsel %vm525_vm2, %v1286_v25, %v1284_v37  ;;  %v1120_v45 = vld [vmem:[#allocation1 + $0x359] sm:$0x80]   ;;  %v1302_v48 = vld [vmem:[#allocation1 + $0x3d1] sm:$0x80]   ;;  %v1118_v49 = vsel %vm537_vm5, %v1116_v41, %v1114_v44  ;;  %91 = vst [vmem:[#allocation1 + $0x350] sm:$0x3] %v1722_v46 }
  0x71   :  { %v1292_v47 = vsel %vm529_vm3, %v1290_v34, %v1288_v42  ;;  %v1730_v50 = vld [vmem:[%s2569_s0 + $0xc4] sm:$0x3]  ;;  %v1355_v52 = vld [vmem:[#allocation1 + $0x28f] sm:$0x4]   ;;  %v1122_v53 = vsel %vm541_vm6, %v1120_v45, %v1118_v49  ;;  %v1754_v54 = vld [vmem:[%s2569_s0 + $0x94] sm:$0x3] }
  0x72   :  { %v1296_v51 = vsel %vm533_vm4, %v1294_v38, %v1292_v47  ;;  %123 = vst [vmem:[#allocation1 + $0x310] sm:$0x3] %v1730_v50  ;;  %v1359_v57 = vld [vmem:[#allocation1 + $0x38e] sm:$0x8]   ;;  %1123 = vrot.lane.b32.xlu2 %v1122_v53, %s1853_s13  ;;  %v1762_v58 = vld [vmem:[%s2569_s0 + $0x84] sm:$0x3] }
  0x73   :  { %v1300_v55 = vsel %vm537_vm5, %v1298_v43, %v1296_v51  ;;  %v1351_v56 = vld [vmem:[#allocation1 + $0x190] sm:$0x2]   ;;  %219 = vst [vmem:[#allocation1 + $0x250] sm:$0x3] %v1754_v54  ;;  %v1786_v61 = vld [vmem:[%s2569_s0 + $0x54] sm:$0x3] }
  0x74   :  { %v1304_v59 = vsel %vm541_vm6, %v1302_v48, %v1300_v55  ;;  %v1363_v60 = vld [vmem:[#allocation1 + $0xcd] sm:$0x10]   ;;  %251 = vst [vmem:[#allocation1 + $0x210] sm:$0x3] %v1762_v58  ;;  %v1794_v0 = vld [vmem:[%s2569_s0 + $0x44] sm:$0x3] }
  0x75   :  { %1305 = vrot.lane.b32.xlu1 %v1304_v59, %s1855_s9  ;;  %v1349_v62 = vld [vmem:[#allocation1 + $0x91] sm:$0x1]   ;;  %347 = vst [vmem:[#allocation1 + $0x150] sm:$0x3] %v1786_v61  ;;  %v1818_v2 = vld [vmem:[%s2569_s0 + $0x14] sm:$0x3] }
  0x76   :  { %v1367_v63 = vld [vmem:[#allocation1 + $0x1cc] sm:$0x20]   ;;  %v1353_v1 = vsel %vm517_vm0, %v1351_v56, %v1349_v62  ;;  %379 = vst [vmem:[#allocation1 + $0x110] sm:$0x3] %v1794_v0  ;;  %v1826_v3 = vld [vmem:[%s2569_s0 + $0x4] sm:$0x3] }
  0x77   :  { %v1357_v4 = vsel %vm521_vm1, %v1355_v52, %v1353_v1  ;;  %475 = vst [vmem:[#allocation1 + $0x50] sm:$0x3] %v1818_v2  ;;  %v1723_v5 = vld [vmem:[%s2569_s0 + $0xd2] sm:$0x3]  ;;  %v1731_v6 = vld [vmem:[%s2569_s0 + $0xc2] sm:$0x3] }
  0x78   :  { %v1361_v7 = vsel %vm525_vm2, %v1359_v57, %v1357_v4  ;;  %v1371_v8 = vld [vmem:[#allocation1 + $0x2cb] sm:$0x40]   ;;  %507 = vst [vmem:[#allocation1 + $0x10] sm:$0x3] %v1826_v3  ;;  %v1755_v9 = vld [vmem:[%s2569_s0 + $0x92] sm:$0x3] }
  0x79   :  { %v1365_v10 = vsel %vm529_vm3, %v1363_v60, %v1361_v7  ;;  %v1375_v11 = vld [vmem:[#allocation1 + $0x3ca] sm:$0x80]   ;;  %95 = vst [vmem:[#allocation1 + $0x348] sm:$0x3] %v1723_v5  ;;  %v1763_v12 = vld [vmem:[%s2569_s0 + $0x82] sm:$0x3] }
  0x7a   :  { %v1369_v13 = vsel %vm533_vm4, %v1367_v63, %v1365_v10  ;;  %127 = vst [vmem:[#allocation1 + $0x308] sm:$0x3] %v1731_v6  ;;  %v1787_v14 = vld [vmem:[%s2569_s0 + $0x52] sm:$0x3]  ;;  %v1795_v16 = vld [vmem:[%s2569_s0 + $0x42] sm:$0x3] }
  0x7b   :  { %v1373_v15 = vsel %vm537_vm5, %v1371_v8, %v1369_v13  ;;  %223 = vst [vmem:[#allocation1 + $0x248] sm:$0x3] %v1755_v9  ;;  %v1819_v18 = vld [vmem:[%s2569_s0 + $0x12] sm:$0x3]  ;;  %v1827_v20 = vld [vmem:[%s2569_s0 + $0x2] sm:$0x3] }
  0x7c   :  { %v1377_v17 = vsel %vm541_vm6, %v1375_v11, %v1373_v15  ;;  %255 = vst [vmem:[#allocation1 + $0x208] sm:$0x3] %v1763_v12  ;;  %v1392_v21 = vld [vmem:[#allocation1 + $0x20e] sm:$0x4]   ;;  %v1203_v24 = vld [vmem:[#allocation1 + $0x99] sm:$0x1]  }
  0x7d   :  { %1378 = vrot.lane.b32.xlu0 %v1377_v17, %s1856_s21  ;;  %v1388_v19 = vld [vmem:[#allocation1 + $0x10f] sm:$0x2]   ;;  %351 = vst [vmem:[#allocation1 + $0x148] sm:$0x3] %v1787_v14  ;;  %v1205_v27 = vld [vmem:[#allocation1 + $0x198] sm:$0x2]  }
  0x7e   :  { %v1396_v22 = vld [vmem:[#allocation1 + $0x30d] sm:$0x8]   ;;  %383 = vst [vmem:[#allocation1 + $0x108] sm:$0x3] %v1795_v16  ;;  %v1207_v30 = vsel %vm517_vm0, %v1205_v27, %v1203_v24  ;;  %v1209_v31 = vld [vmem:[#allocation1 + $0x297] sm:$0x4]  }
  0x7f   :  { %v1386_v23 = vld [vmem:[#allocation1 + $0x10] sm:$0x1]   ;;  %479 = vst [vmem:[#allocation1 + $0x48] sm:$0x3] %v1819_v18  ;;  %v1213_v32 = vld [vmem:[#allocation1 + $0x396] sm:$0x8]   ;;  %v1211_v35 = vsel %vm521_vm1, %v1209_v31, %v1207_v30 }
  0x80   :  { %v1390_v25 = vsel %vm517_vm0, %v1388_v19, %v1386_v23  ;;  %v1400_v26 = vld [vmem:[#allocation1 + $0x4c] sm:$0x10]   ;;  %511 = vst [vmem:[#allocation1 + $0x8] sm:$0x3] %v1827_v20  ;;  %v1217_v36 = vld [vmem:[#allocation1 + $0xd5] sm:$0x10]   ;;  %v1215_v40 = vsel %vm525_vm2, %v1213_v32, %v1211_v35 }
  0x81   :  { %v1394_v28 = vsel %vm521_vm1, %v1392_v21, %v1390_v25  ;;  %v1404_v29 = vld [vmem:[#allocation1 + $0x14b] sm:$0x20]   ;;  %v1221_v37 = vld [vmem:[#allocation1 + $0x1d4] sm:$0x20]   ;;  %v1219_v44 = vsel %vm529_vm3, %v1217_v36, %v1215_v40  ;;  %v1707_v46 = vld [vmem:[%s2569_s0 + $0xf2] sm:$0x3] }
  0x82   :  { %v1398_v33 = vsel %vm525_vm2, %v1396_v22, %v1394_v28  ;;  %v1408_v34 = vld [vmem:[#allocation1 + $0x24a] sm:$0x40]   ;;  %v1225_v41 = vld [vmem:[#allocation1 + $0x2d3] sm:$0x40]   ;;  %v1715_v47 = vld [vmem:[%s2569_s0 + $0xe2] sm:$0x3]  ;;  %v1223_v51 = vsel %vm533_vm4, %v1221_v37, %v1219_v44 }
  0x83   :  { %v1402_v38 = vsel %vm529_vm3, %v1400_v26, %v1398_v33  ;;  %v1412_v39 = vld [vmem:[#allocation1 + $0x349] sm:$0x80]   ;;  %v1465_v43 = vld [vmem:[#allocation1 + $0x207] sm:$0x4]   ;;  %v1229_v45 = vld [vmem:[#allocation1 + $0x3d2] sm:$0x80]   ;;  %v1227_v55 = vsel %vm537_vm5, %v1225_v41, %v1223_v51 }
  0x84   :  { %v1406_v42 = vsel %vm533_vm4, %v1404_v29, %v1402_v38  ;;  %v1469_v50 = vld [vmem:[#allocation1 + $0x306] sm:$0x8]   ;;  %31 = vst [vmem:[#allocation1 + $0x3c8] sm:$0x3] %v1707_v46  ;;  %v1739_v52 = vld [vmem:[%s2569_s0 + $0xb2] sm:$0x3]  ;;  %v1231_v59 = vsel %vm541_vm6, %v1229_v45, %v1227_v55 }
  0x85   :  { %v1410_v48 = vsel %vm537_vm5, %v1408_v34, %v1406_v42  ;;  %v1461_v49 = vld [vmem:[#allocation1 + $0x108] sm:$0x2]   ;;  %63 = vst [vmem:[#allocation1 + $0x388] sm:$0x3] %v1715_v47  ;;  %v1747_v56 = vld [vmem:[%s2569_s0 + $0xa2] sm:$0x3]  ;;  %1232 = vrot.lane.b32.xlu2 %v1231_v59, %s1854_s8 }
  0x86   :  { %v1414_v53 = vsel %vm541_vm6, %v1412_v39, %v1410_v48  ;;  %v1473_v54 = vld [vmem:[#allocation1 + $0x45] sm:$0x10]   ;;  %s1857_s2 = smov 32   ;;  %159 = vst [vmem:[#allocation1 + $0x2c8] sm:$0x3] %v1739_v52  ;;  %s1858_s12 = smov 24  }
  0x87   :  { %1415 = vrot.lane.b32.xlu1 %v1414_v53, %s1857_s2  ;;  %v1459_v57 = vld [vmem:[#allocation1 + $0x9] sm:$0x1]   ;;  %v1771_v60 = vld [vmem:[%s2569_s0 + $0x72] sm:$0x3]  ;;  %191 = vst [vmem:[#allocation1 + $0x288] sm:$0x3] %v1747_v56 }
  0x88   :  { %v1477_v58 = vld [vmem:[#allocation1 + $0x144] sm:$0x20]   ;;  %v1463_v61 = vsel %vm517_vm0, %v1461_v49, %v1459_v57  ;;  %v1779_v63 = vld [vmem:[%s2569_s0 + $0x62] sm:$0x3]  ;;  %v1803_v0 = vld [vmem:[%s2569_s0 + $0x32] sm:$0x3] }
  0x89   :  { %v1481_v62 = vld [vmem:[#allocation1 + $0x243] sm:$0x40]   ;;  %v1467_v1 = vsel %vm521_vm1, %v1465_v43, %v1463_v61  ;;  %287 = vst [vmem:[#allocation1 + $0x1c8] sm:$0x3] %v1771_v60  ;;  %v1811_v3 = vld [vmem:[%s2569_s0 + $0x22] sm:$0x3] }
  0x8a   :  { %v1485_v2 = vld [vmem:[#allocation1 + $0x342] sm:$0x80]   ;;  %v1313_v4 = vld [vmem:[#allocation1 + $0x11] sm:$0x1]   ;;  %v1471_v5 = vsel %vm525_vm2, %v1469_v50, %v1467_v1  ;;  %319 = vst [vmem:[#allocation1 + $0x188] sm:$0x3] %v1779_v63 }
  0x8b   :  { %v1315_v6 = vld [vmem:[#allocation1 + $0x110] sm:$0x2]   ;;  %v1475_v8 = vsel %vm529_vm3, %v1473_v54, %v1471_v5  ;;  %415 = vst [vmem:[#allocation1 + $0xc8] sm:$0x3] %v1803_v0  ;;  %v1732_v33 = vld [vmem:[%s2569_s0 + $0xc0] sm:$0x3] }
  0x8c   :  { %v1319_v7 = vld [vmem:[#allocation1 + $0x20f] sm:$0x4]   ;;  %v1317_v9 = vsel %vm517_vm0, %v1315_v6, %v1313_v4  ;;  %v1479_v12 = vsel %vm533_vm4, %v1477_v58, %v1475_v8  ;;  %447 = vst [vmem:[#allocation1 + $0x88] sm:$0x3] %v1811_v3  ;;  %v1505_v27 = vld [vmem:[#allocation1 + $0x386] sm:$0x8]   ;;  %v2455_v6 = vpop.permute.xlu1 %685  }
  0x8d   :  { %v1323_v10 = vld [vmem:[#allocation1 + $0x30e] sm:$0x8]   ;;  %v1321_v13 = vsel %vm521_vm1, %v1319_v7, %v1317_v9  ;;  %v1483_v14 = vsel %vm537_vm5, %v1481_v62, %v1479_v12  ;;  %v1578_v29 = vld [vmem:[#allocation1 + $0x385] sm:$0x8]   ;;  %131 = vst [vmem:[#allocation1 + $0x300] sm:$0x3] %v1732_v33  ;;  %v2451_v3 = vpop.permute.xlu2 %758  }
  0x8e   :  { %v1327_v11 = vld [vmem:[#allocation1 + $0x4d] sm:$0x10]   ;;  %v1325_v15 = vsel %vm525_vm2, %v1323_v10, %v1321_v13  ;;  %v1487_v17 = vsel %vm541_vm6, %v1485_v2, %v1483_v14  ;;  %v1501_v22 = vld [vmem:[#allocation1 + $0x287] sm:$0x4]   ;;  %v1574_v23 = vld [vmem:[#allocation1 + $0x286] sm:$0x4]   ;;  %v2449_v2 = vpop.permute.xlu0 %612  }
  0x8f   :  { %v1331_v16 = vld [vmem:[#allocation1 + $0x14c] sm:$0x20]   ;;  %v1329_v18 = vsel %vm529_vm3, %v1327_v11, %v1325_v15  ;;  %1488 = vrot.lane.b32.xlu0 %v1487_v17, %s1858_s12  ;;  %v1517_v38 = vld [vmem:[#allocation1 + $0x2c3] sm:$0x40]   ;;  %v1748_v41 = vld [vmem:[%s2569_s0 + $0xa0] sm:$0x3] }
  0x90   :  { %v1335_v19 = vld [vmem:[#allocation1 + $0x24b] sm:$0x40]   ;;  %v1333_v20 = vsel %vm533_vm4, %v1331_v16, %v1329_v18  ;;  %v1513_v35 = vld [vmem:[#allocation1 + $0x1c4] sm:$0x20]   ;;  %v1586_v46 = vld [vmem:[#allocation1 + $0x1c3] sm:$0x20]  }
  0x91   :  { %v1339_v21 = vld [vmem:[#allocation1 + $0x34a] sm:$0x80]   ;;  %v1337_v24 = vsel %vm537_vm5, %v1335_v19, %v1333_v20  ;;  %v1497_v26 = vld [vmem:[#allocation1 + $0x188] sm:$0x2]   ;;  %v1570_v28 = vld [vmem:[#allocation1 + $0x187] sm:$0x2]  }
  0x92   :  { %v1724_v25 = vld [vmem:[%s2569_s0 + $0xd0] sm:$0x3]  ;;  %v1341_v30 = vsel %vm541_vm6, %v1339_v21, %v1337_v24  ;;  %v1509_v31 = vld [vmem:[#allocation1 + $0xc5] sm:$0x10]   ;;  %v1582_v32 = vld [vmem:[#allocation1 + $0xc4] sm:$0x10]  }
  0x93   :  { %99 = vst [vmem:[#allocation1 + $0x340] sm:$0x3] %v1724_v25  ;;  %1342 = vrot.lane.b32.xlu2 %v1341_v30, %s1856_s21  ;;  %v1495_v34 = vld [vmem:[#allocation1 + $0x89] sm:$0x1]   ;;  %v1568_v36 = vld [vmem:[#allocation1 + $0x88] sm:$0x1]  }
  0x94   :  { %v1499_v37 = vsel %vm517_vm0, %v1497_v26, %v1495_v34  ;;  %v1572_v39 = vsel %vm517_vm0, %v1570_v28, %v1568_v36  ;;  %v1740_v40 = vld [vmem:[%s2569_s0 + $0xb0] sm:$0x3]  ;;  %v1521_v44 = vld [vmem:[#allocation1 + $0x3c2] sm:$0x80]   ;;  %v1764_v47 = vld [vmem:[%s2569_s0 + $0x80] sm:$0x3]  ;;  %v2469_v34 = vpop.permute.xlu1 %721  }
  0x95   :  { %v1756_v42 = vld [vmem:[%s2569_s0 + $0x90] sm:$0x3]  ;;  %v1503_v43 = vsel %vm521_vm1, %v1501_v22, %v1499_v37  ;;  %v1576_v45 = vsel %vm521_vm1, %v1574_v23, %v1572_v39  ;;  %163 = vst [vmem:[#allocation1 + $0x2c0] sm:$0x3] %v1740_v40  ;;  %v1590_v50 = vld [vmem:[#allocation1 + $0x2c2] sm:$0x40]  }
  0x96   :  { %v1507_v48 = vsel %vm525_vm2, %v1505_v27, %v1503_v43  ;;  %v1580_v49 = vsel %vm525_vm2, %v1578_v29, %v1576_v45  ;;  %195 = vst [vmem:[#allocation1 + $0x280] sm:$0x3] %v1748_v41  ;;  %v1788_v51 = vld [vmem:[%s2569_s0 + $0x50] sm:$0x3]  ;;  %v1594_v54 = vld [vmem:[#allocation1 + $0x3c1] sm:$0x80]   ;;  %v2464_v26 = vpop.permute.xlu0 %648  }
  0x97   :  { %v1511_v52 = vsel %vm529_vm3, %v1509_v31, %v1507_v48  ;;  %v1584_v53 = vsel %vm529_vm3, %v1582_v32, %v1580_v49  ;;  %227 = vst [vmem:[#allocation1 + $0x240] sm:$0x3] %v1756_v42  ;;  %v1796_v55 = vld [vmem:[%s2569_s0 + $0x40] sm:$0x3]  ;;  %v1804_v58 = vld [vmem:[%s2569_s0 + $0x30] sm:$0x3] }
  0x98   :  { %v1515_v56 = vsel %vm533_vm4, %v1513_v35, %v1511_v52  ;;  %v1588_v57 = vsel %vm533_vm4, %v1586_v46, %v1584_v53  ;;  %259 = vst [vmem:[#allocation1 + $0x200] sm:$0x3] %v1764_v47  ;;  %v1812_v61 = vld [vmem:[%s2569_s0 + $0x20] sm:$0x3]  ;;  %v1820_v0 = vld [vmem:[%s2569_s0 + $0x10] sm:$0x3] }
  0x99   :  { %v1519_v59 = vsel %vm537_vm5, %v1517_v38, %v1515_v56  ;;  %v1592_v60 = vsel %vm537_vm5, %v1590_v50, %v1588_v57  ;;  %355 = vst [vmem:[#allocation1 + $0x140] sm:$0x3] %v1788_v51  ;;  %v512_v1 = vld [vmem:[%s2569_s0] sm:$0x3]  ;;  %s1859_s7 = smov 16   ;;  %vm543_vm7 = vcmask 64512  }
  0x9a   :  { %v1523_v62 = vsel %vm541_vm6, %v1521_v44, %v1519_v59  ;;  %v1596_v63 = vsel %vm541_vm6, %v1594_v54, %v1592_v60  ;;  %387 = vst [vmem:[#allocation1 + $0x100] sm:$0x3] %v1796_v55  ;;  %v1422_v4 = vld [vmem:[#allocation1 + $0x90] sm:$0x1]   ;;  %v1532_v25 = vld [vmem:[#allocation1 + $0x8] sm:$0x1]  }
  0x9b   :  { %1524 = vrot.lane.b32.xlu1 %v1523_v62, %s1858_s12  ;;  %1597 = vrot.lane.b32.xlu0 %v1596_v63, %s1859_s7  ;;  %419 = vst [vmem:[#allocation1 + $0xc0] sm:$0x3] %v1804_v58  ;;  %v1424_v5 = vld [vmem:[#allocation1 + $0x18f] sm:$0x2]   ;;  %v1615_v30 = vld [vmem:[#allocation1 + $0x2fe] sm:$0x8]  }
  0x9c   :  { %451 = vst [vmem:[#allocation1 + $0x80] sm:$0x3] %v1812_v61  ;;  %v1426_v7 = vsel %vm517_vm0, %v1424_v5, %v1422_v4  ;;  %v1428_v8 = vld [vmem:[#allocation1 + $0x28e] sm:$0x4]   ;;  %v558_v29 = vld [vmem:[#allocation1 + $0x2bd] sm:$0x8]  }
  0x9d   :  { %483 = vst [vmem:[#allocation1 + $0x40] sm:$0x3] %v1820_v0  ;;  %v1430_v9 = vsel %vm521_vm1, %v1428_v8, %v1426_v7  ;;  %v1432_v10 = vld [vmem:[#allocation1 + $0x38d] sm:$0x8]   ;;  %v554_v17 = vld [vmem:[#allocation1 + $0x27e] sm:$0x4]   ;;  %v2466_v27 = vpop.permute.xlu2 %794  }
  0x9e   :  { %513 = vst [vmem:[#allocation1] sm:$0x3] %v512_v1  ;;  %v1434_v11 = vsel %vm525_vm2, %v1432_v10, %v1430_v9  ;;  %v550_v13 = vld [vmem:[#allocation1 + $0x23f] sm:$0x2]   ;;  %v1436_v14 = vld [vmem:[#allocation1 + $0xcc] sm:$0x10]   ;;  %v2501_v10 = vpop.permute.xlu0 %831  }
  0x9f   :  { %v548_v12 = vld [vmem:[#allocation1 + $0x200] sm:$0x1]   ;;  %v1438_v15 = vsel %vm529_vm3, %v1436_v14, %v1434_v11  ;;  %v1440_v16 = vld [vmem:[#allocation1 + $0x1cb] sm:$0x20]   ;;  %v1611_v22 = vld [vmem:[#allocation1 + $0x1ff] sm:$0x4]  }
  0xa0   :  { %v1442_v18 = vsel %vm533_vm4, %v1440_v16, %v1438_v15  ;;  %v1444_v19 = vld [vmem:[#allocation1 + $0x2ca] sm:$0x40]   ;;  %v552_v20 = vsel %vm517_vm0, %v550_v13, %v548_v12  ;;  %v1534_v32 = vld [vmem:[#allocation1 + $0x107] sm:$0x2]   ;;  %v1623_v43 = vld [vmem:[#allocation1 + $0x13c] sm:$0x20]  }
  0xa1   :  { %v1607_v21 = vld [vmem:[#allocation1 + $0x100] sm:$0x2]   ;;  %v1446_v23 = vsel %vm537_vm5, %v1444_v19, %v1442_v18  ;;  %v1448_v24 = vld [vmem:[#allocation1 + $0x3c9] sm:$0x80]   ;;  %v1538_v33 = vld [vmem:[#allocation1 + $0x206] sm:$0x4]   ;;  %v1536_v37 = vsel %vm517_vm0, %v1534_v32, %v1532_v25  ;;  %v556_v41 = vsel %vm521_vm1, %v554_v17, %v552_v20 }
  0xa2   :  { %v1450_v31 = vsel %vm541_vm6, %v1448_v24, %v1446_v23  ;;  %v1542_v38 = vld [vmem:[#allocation1 + $0x305] sm:$0x8]   ;;  %v524_v40 = vld [vmem:[#allocation1 + $0xbd] sm:$0x8]   ;;  %v1540_v44 = vsel %vm521_vm1, %v1538_v33, %v1536_v37  ;;  %v1708_v56 = vld [vmem:[%s2569_s0 + $0xf0] sm:$0x3]  ;;  %v560_v59 = vsel %vm525_vm2, %v558_v29, %v556_v41 }
  0xa3   :  { %v520_v28 = vld [vmem:[#allocation1 + $0x7e] sm:$0x4]   ;;  %1451 = vrot.lane.b32.xlu2 %v1450_v31, %s1857_s2  ;;  %v1546_v45 = vld [vmem:[#allocation1 + $0x44] sm:$0x10]   ;;  %v1544_v49 = vsel %vm525_vm2, %v1542_v38, %v1540_v44  ;;  %v1772_v58 = vld [vmem:[%s2569_s0 + $0x70] sm:$0x3] }
  0xa4   :  { %v516_v35 = vld [vmem:[#allocation1 + $0x3f] sm:$0x2]   ;;  %v1619_v36 = vld [vmem:[#allocation1 + $0x3d] sm:$0x10]   ;;  %v1550_v50 = vld [vmem:[#allocation1 + $0x143] sm:$0x20]   ;;  %v1548_v55 = vsel %vm529_vm3, %v1546_v45, %v1544_v49 }
  0xa5   :  { %v514_v39 = vld [vmem:[#allocation1] sm:$0x1]   ;;  %v1605_v42 = vld [vmem:[#allocation1 + $0x1] sm:$0x1]   ;;  %v1554_v51 = vld [vmem:[#allocation1 + $0x242] sm:$0x40]   ;;  %v1552_v62 = vsel %vm533_vm4, %v1550_v50, %v1548_v55  ;;  %v2505_v14 = vpop.permute.xlu1 %867  }
  0xa6   :  { %v518_v46 = vsel %vm517_vm0, %v516_v35, %v514_v39  ;;  %v562_v47 = vld [vmem:[#allocation1 + $0x2fc] sm:$0x10]   ;;  %v1609_v48 = vsel %vm517_vm0, %v1607_v21, %v1605_v42  ;;  %v1558_v52 = vld [vmem:[#allocation1 + $0x341] sm:$0x80]   ;;  %v1627_v61 = vld [vmem:[#allocation1 + $0x23b] sm:$0x40]   ;;  %v1556_v4 = vsel %vm537_vm5, %v1554_v51, %v1552_v62 }
  0xa7   :  { %v522_v53 = vsel %vm521_vm1, %v520_v28, %v518_v46  ;;  %v1613_v54 = vsel %vm521_vm1, %v1611_v22, %v1609_v48  ;;  %v1716_v57 = vld [vmem:[%s2569_s0 + $0xe0] sm:$0x3]  ;;  %35 = vst [vmem:[#allocation1 + $0x3c0] sm:$0x3] %v1708_v56  ;;  %v1560_v9 = vsel %vm541_vm6, %v1558_v52, %v1556_v4  ;;  %v564_v11 = vsel %vm529_vm3, %v562_v47, %v560_v59 }
  0xa8   :  { %v1617_v60 = vsel %vm525_vm2, %v1615_v30, %v1613_v54  ;;  %v1780_v63 = vld [vmem:[%s2569_s0 + $0x60] sm:$0x3]  ;;  %67 = vst [vmem:[#allocation1 + $0x380] sm:$0x3] %v1716_v57  ;;  %v526_v5 = vsel %vm525_vm2, %v524_v40, %v522_v53  ;;  %s1860_s0 = smov 8   ;;  %vm614_vm8 = vcmask 1048512  }
  0xa9   :  { %v1621_v0 = vsel %vm529_vm3, %v1619_v36, %v1617_v60  ;;  %v1631_v1 = vld [vmem:[#allocation1 + $0x33a] sm:$0x80]   ;;  %v528_v7 = vld [vmem:[#allocation1 + $0xfc] sm:$0x10]   ;;  %291 = vst [vmem:[#allocation1 + $0x1c0] sm:$0x3] %v1772_v58 }
  0xaa   :  { %v1625_v8 = vsel %vm533_vm4, %v1623_v43, %v1621_v0  ;;  %v566_v12 = vld [vmem:[#allocation1 + $0x33b] sm:$0x20]   ;;  %323 = vst [vmem:[#allocation1 + $0x180] sm:$0x3] %v1780_v63  ;;  %v530_v17 = vsel %vm529_vm3, %v528_v7, %v526_v5  ;;  %v1641_v23 = vld [vmem:[#allocation1 + $0x81] sm:$0x1]  }
  0xab   :  { %v1629_v13 = vsel %vm537_vm5, %v1627_v61, %v1625_v8  ;;  %1561 = vrot.lane.b32.xlu2 %v1560_v9, %s1859_s7  ;;  %v532_v18 = vld [vmem:[#allocation1 + $0x13b] sm:$0x20]   ;;  %v568_v19 = vsel %vm533_vm4, %v566_v12, %v564_v11  ;;  %v1647_v28 = vld [vmem:[#allocation1 + $0x27f] sm:$0x4]   ;;  %vm687_vm9 = vcmask 982912   ;;  %vm760_vm10 = vcmask 917312  }
  0xac   :  { %v1633_v15 = vsel %vm541_vm6, %v1631_v1, %v1629_v13  ;;  %v905_v16 = vpop.permute.xlu2 %904   ;;  %v534_v21 = vsel %vm533_vm4, %v532_v18, %v530_v17  ;;  %v1655_v36 = vld [vmem:[#allocation1 + $0xbd] sm:$0x10]   ;;  %vm833_vm11 = vcmask 851712   ;;  %vm906_vm12 = vcmask 786112  }
  0xad   :  { %1634 = vrot.lane.b32.xlu1 %v1633_v15, %s1860_s0  ;;  %v941_v33 = vpop.permute.xlu0 %940   ;;  %v1663_v42 = vld [vmem:[#allocation1 + $0x2bb] sm:$0x40]   ;;  %vm979_vm13 = vcmask 720512   ;;  %vm1052_vm14 = vcmask 654912   ;;  %vm1125_vm15 = vcmask 589312  }
  0xae   :  { %v574_v20 = vld [vmem:[#allocation1 + $0x3b9] sm:$0x80]   ;;  %v1667_v44 = vld [vmem:[#allocation1 + $0x3ba] sm:$0x80]  }
  0xaf   :  { %v570_v22 = vld [vmem:[#allocation1 + $0x37a] sm:$0x40]   ;;  %v1651_v31 = vld [vmem:[#allocation1 + $0x37e] sm:$0x8]  }
  0xb0   :  { %v540_v24 = vld [vmem:[#allocation1 + $0x1b9] sm:$0x80]   ;;  %v572_v25 = vsel %vm537_vm5, %v570_v22, %v568_v19  ;;  %v1659_v39 = vld [vmem:[#allocation1 + $0x1bc] sm:$0x20]  }
  0xb1   :  { %v576_v29 = vsel %vm541_vm6, %v574_v20, %v572_v25  ;;  %v1643_v30 = vld [vmem:[#allocation1 + $0x180] sm:$0x2]   ;;  %v536_v32 = vld [vmem:[#allocation1 + $0x17a] sm:$0x40]  }
  0xb2   :  { %v1645_v35 = vsel %vm517_vm0, %v1643_v30, %v1641_v23  ;;  %v538_v37 = vsel %vm537_vm5, %v536_v32, %v534_v21  ;;  %579 = vst.msk [vmem:[#allocation0 + $0x2] ss:$8 sm:$0xf] %vm543_vm7, %v576_v29   ;;  %vm1198_vm0 = vcmask 523712  }
  0xb3   :  { %v1649_v38 = vsel %vm521_vm1, %v1647_v28, %v1645_v35  ;;  %v542_v40 = vsel %vm541_vm6, %v540_v24, %v538_v37  ;;  %581 = vst.msk [vmem:[#allocation0 - $0x1d] ss:$8 sm:$0xf0] %vm543_vm7, %v576_v29   ;;  %vm1271_vm1 = vcmask 458112  }
  0xb4   :  { %v1653_v41 = vsel %vm525_vm2, %v1651_v31, %v1649_v38  ;;  %544 = vst.msk [vmem:[#allocation0] ss:$8 sm:$0xf] %vm543_vm7, %v542_v40   ;;  %vm1344_vm2 = vcmask 392512  }
  0xb5   :  { %v1657_v43 = vsel %vm529_vm3, %v1655_v36, %v1653_v41  ;;  %546 = vst.msk [vmem:[#allocation0 - $0x1f] ss:$8 sm:$0xf0] %vm543_vm7, %v542_v40   ;;  %vm1417_vm3 = vcmask 326912  }
  0xb6   :  { %v1661_v45 = vsel %vm533_vm4, %v1659_v39, %v1657_v43  ;;  %615 = vst.msk [vmem:[#allocation0] sm:$0xf] %vm614_vm8, %v2449_v2   ;;  %vm1490_vm4 = vcmask 261312  }
  0xb7   :  { %v1665_v46 = vsel %vm537_vm5, %v1663_v42, %v1661_v45  ;;  %617 = vst.msk [vmem:[#allocation0 + $0x4] sm:$0xf0] %vm614_vm8, %v2449_v2   ;;  %vm1563_vm5 = vcmask 195712  }
  0xb8   :  { %v1669_v47 = vsel %vm541_vm6, %v1667_v44, %v1665_v46  ;;  %688 = vst.msk [vmem:[#allocation0] sm:$0xf] %vm687_vm9, %v2455_v6   ;;  %vm1636_vm6 = vcmask 130112  }
  0xb9   :  { %v1014_v2 = vpop.permute.xlu2 %1013   ;;  %v978_v48 = vpop.permute.xlu1 %977   ;;  %1670 = vrot.lane.b32.xlu2 %v1669_v47, %s1860_s0  ;;  %690 = vst.msk [vmem:[#allocation0 + $0x4] sm:$0xf0] %vm687_vm9, %v2455_v6  }
  0xba   :  { %761 = vst.msk [vmem:[#allocation0] sm:$0xf] %vm760_vm10, %v2451_v3  }
  0xbb   :  { %763 = vst.msk [vmem:[#allocation0 + $0x4] sm:$0xf0] %vm760_vm10, %v2451_v3  }
  0xbc   :  { %652 = vst.msk [vmem:[#allocation0 + $0x10] sm:$0xf] %vm614_vm8, %v2464_v26  }
  0xbd   :  { %654 = vst.msk [vmem:[#allocation0 + $0x14] sm:$0xf0] %vm614_vm8, %v2464_v26  }
  0xbe   :  { %725 = vst.msk [vmem:[#allocation0 + $0x10] sm:$0xf] %vm687_vm9, %v2469_v34  }
  0xbf   :  { %727 = vst.msk [vmem:[#allocation0 + $0x14] sm:$0xf0] %vm687_vm9, %v2469_v34  }
  0xc0   :  { %798 = vst.msk [vmem:[#allocation0 + $0x10] sm:$0xf] %vm760_vm10, %v2466_v27  }
  0xc1   :  { %v1051_v3 = vpop.permute.xlu0 %1050   ;;  %800 = vst.msk [vmem:[#allocation0 + $0x14] sm:$0xf0] %vm760_vm10, %v2466_v27  }
  0xc2   :  { %834 = vst.msk [vmem:[#allocation0] sm:$0xf] %vm833_vm11, %v2501_v10  }
  0xc3   :  { %836 = vst.msk [vmem:[#allocation0 + $0x4] sm:$0xf0] %vm833_vm11, %v2501_v10  }
  0xc4   :  { %907 = vst.msk [vmem:[#allocation0] sm:$0xf] %vm906_vm12, %v905_v16  }
  0xc5   :  { %909 = vst.msk [vmem:[#allocation0 + $0x4] sm:$0xf0] %vm906_vm12, %v905_v16  }
  0xc6   :  { %871 = vst.msk [vmem:[#allocation0 + $0x10] sm:$0xf] %vm833_vm11, %v2505_v14  }
  0xc7   :  { %873 = vst.msk [vmem:[#allocation0 + $0x14] sm:$0xf0] %vm833_vm11, %v2505_v14  }
  0xc8   :  { %944 = vst.msk [vmem:[#allocation0 + $0x10] sm:$0xf] %vm906_vm12, %v941_v33  }
  0xc9   :  { %946 = vst.msk [vmem:[#allocation0 + $0x14] sm:$0xf0] %vm906_vm12, %v941_v33  }
  0xca   :  { %1017 = vst.msk [vmem:[#allocation0 + $0x10] sm:$0xf] %vm979_vm13, %v1014_v2  }
  0xcb   :  { %v1087_v6 = vpop.permute.xlu1 %1086   ;;  %v1160_v26 = vpop.permute.xlu0 %1159   ;;  %1019 = vst.msk [vmem:[#allocation0 + $0x14] sm:$0xf0] %vm979_vm13, %v1014_v2  }
  0xcc   :  { %980 = vst.msk [vmem:[#allocation0] sm:$0xf] %vm979_vm13, %v978_v48   ;;  %v1124_v27 = vpop.permute.xlu2 %1123  }
  0xcd   :  { %982 = vst.msk [vmem:[#allocation0 + $0x4] sm:$0xf0] %vm979_vm13, %v978_v48  }
  0xce   :  { %1053 = vst.msk [vmem:[#allocation0] sm:$0xf] %vm1052_vm14, %v1051_v3  }
  0xcf   :  { %1055 = vst.msk [vmem:[#allocation0 + $0x4] sm:$0xf0] %vm1052_vm14, %v1051_v3  }
  0xd0   :  { %1126 = vst.msk [vmem:[#allocation0] sm:$0xf] %vm1125_vm15, %v1124_v27  }
  0xd1   :  { %1128 = vst.msk [vmem:[#allocation0 + $0x4] sm:$0xf0] %vm1125_vm15, %v1124_v27  }
  0xd2   :  { %1090 = vst.msk [vmem:[#allocation0 + $0x10] sm:$0xf] %vm1052_vm14, %v1087_v6  }
  0xd3   :  { %1092 = vst.msk [vmem:[#allocation0 + $0x14] sm:$0xf0] %vm1052_vm14, %v1087_v6  }
  0xd4   :  { %1163 = vst.msk [vmem:[#allocation0 + $0x10] sm:$0xf] %vm1125_vm15, %v1160_v26  }
  0xd5   :  { %1165 = vst.msk [vmem:[#allocation0 + $0x14] sm:$0xf0] %vm1125_vm15, %v1160_v26  }
  0xda   :  { %v1197_v34 = vpop.permute.xlu1 %1196   ;;  %v1270_v49 = vpop.permute.xlu0 %1269  }
  0xdb   :  { %1199 = vst.msk [vmem:[#allocation0] sm:$0xf] %vm1198_vm0, %v1197_v34  }
  0xdc   :  { %1201 = vst.msk [vmem:[#allocation0 + $0x4] sm:$0xf0] %vm1198_vm0, %v1197_v34  }
  0xdd   :  { %1272 = vst.msk [vmem:[#allocation0] sm:$0xf] %vm1271_vm1, %v1270_v49  }
  0xde   :  { %1274 = vst.msk [vmem:[#allocation0 + $0x4] sm:$0xf0] %vm1271_vm1, %v1270_v49  }
  0xdf   :  { %v1233_v50 = vpop.permute.xlu2 %1232  }
  0xe0   :  { %1236 = vst.msk [vmem:[#allocation0 + $0x10] sm:$0xf] %vm1198_vm0, %v1233_v50  }
  0xe1   :  { %1238 = vst.msk [vmem:[#allocation0 + $0x14] sm:$0xf0] %vm1198_vm0, %v1233_v50  }
  0xe7   :  { %v1306_v51 = vpop.permute.xlu1 %1305  }
  0xe8   :  { %1309 = vst.msk [vmem:[#allocation0 + $0x10] sm:$0xf] %vm1271_vm1, %v1306_v51  }
  0xe9   :  { %1311 = vst.msk [vmem:[#allocation0 + $0x14] sm:$0xf0] %vm1271_vm1, %v1306_v51  }
  0xed   :  { %v1343_v52 = vpop.permute.xlu2 %1342  }
  0xee   :  { %1345 = vst.msk [vmem:[#allocation0] sm:$0xf] %vm1344_vm2, %v1343_v52  }
  0xef   :  { %1347 = vst.msk [vmem:[#allocation0 + $0x4] sm:$0xf0] %vm1344_vm2, %v1343_v52   ;;  %v1379_v53 = vpop.permute.xlu0 %1378  }
  0xf0   :  { %1382 = vst.msk [vmem:[#allocation0 + $0x10] sm:$0xf] %vm1344_vm2, %v1379_v53  }
  0xf1   :  { %1384 = vst.msk [vmem:[#allocation0 + $0x14] sm:$0xf0] %vm1344_vm2, %v1379_v53  }
  0xf9   :  { %v1416_v54 = vpop.permute.xlu1 %1415  }
  0xfa   :  { %1418 = vst.msk [vmem:[#allocation0] sm:$0xf] %vm1417_vm3, %v1416_v54  }
  0xfb   :  { %1420 = vst.msk [vmem:[#allocation0 + $0x4] sm:$0xf0] %vm1417_vm3, %v1416_v54  }
  0xfd   :  { %v1452_v55 = vpop.permute.xlu2 %1451  }
  0xfe   :  { %1455 = vst.msk [vmem:[#allocation0 + $0x10] sm:$0xf] %vm1417_vm3, %v1452_v55  }
  0xff   :  { %1457 = vst.msk [vmem:[#allocation0 + $0x14] sm:$0xf0] %vm1417_vm3, %v1452_v55  }
 0x101   :  { %v1489_v56 = vpop.permute.xlu0 %1488  }
 0x102   :  { %1491 = vst.msk [vmem:[#allocation0] sm:$0xf] %vm1490_vm4, %v1489_v56  }
 0x103   :  { %1493 = vst.msk [vmem:[#allocation0 + $0x4] sm:$0xf0] %vm1490_vm4, %v1489_v56  }
 0x105   :  { %v1562_v57 = vpop.permute.xlu2 %1561  }
 0x106   :  { %1564 = vst.msk [vmem:[#allocation0] sm:$0xf] %vm1563_vm5, %v1562_v57  }
 0x107   :  { %1566 = vst.msk [vmem:[#allocation0 + $0x4] sm:$0xf0] %vm1563_vm5, %v1562_v57  }
 0x10d   :  { %v1525_v58 = vpop.permute.xlu1 %1524   ;;  %v1598_v59 = vpop.permute.xlu0 %1597  }
 0x10e   :  { %1528 = vst.msk [vmem:[#allocation0 + $0x10] sm:$0xf] %vm1490_vm4, %v1525_v58  }
 0x10f   :  { %1530 = vst.msk [vmem:[#allocation0 + $0x14] sm:$0xf0] %vm1490_vm4, %v1525_v58  }
 0x110   :  { %1601 = vst.msk [vmem:[#allocation0 + $0x10] sm:$0xf] %vm1563_vm5, %v1598_v59  }
 0x111   :  { %1603 = vst.msk [vmem:[#allocation0 + $0x14] sm:$0xf0] %vm1563_vm5, %v1598_v59  }
 0x113   :  { %v1671_v60 = vpop.permute.xlu2 %1670  }
 0x114   :  { %1674 = vst.msk [vmem:[#allocation0 + $0x10] sm:$0xf] %vm1636_vm6, %v1671_v60  }
 0x115   :  { %1676 = vst.msk [vmem:[#allocation0 + $0x14] sm:$0xf0] %vm1636_vm6, %v1671_v60  }
 0x11b   :  { %v1690_v61 = vld [vmem:[#allocation0 + $0x10] sm:$0xf] }
 0x11c   :  { %1829 = vst [vmem:[%s2570_s1 + $0x8] sm:$0xf] %v1690_v61  ;;  %v1696_v62 = vld [vmem:[#allocation0 + $0x18] sm:$0xf] }
 0x11d   :  { %1830 = vst [vmem:[%s2570_s1 + $0xc] sm:$0xf] %v1696_v62 }
 0x11f   :  { %v1635_v63 = vpop.permute.xlu1 %1634  }
 0x120   :  { %1637 = vst.msk [vmem:[#allocation0] sm:$0xf] %vm1636_vm6, %v1635_v63  }
 0x121   :  { %1639 = vst.msk [vmem:[#allocation0 + $0x4] sm:$0xf0] %vm1636_vm6, %v1635_v63  }
 0x127   :  { %v1679_v0 = vld [vmem:[#allocation0] sm:$0xf] }
 0x128   :  { %1682 = vst [vmem:[%s2570_s1] sm:$0xf] %v1679_v0  ;;  %v1684_v1 = vld [vmem:[#allocation0 + $0x8] sm:$0xf] }
 0x129   :  { %1828 = vst [vmem:[%s2570_s1 + $0x4] sm:$0xf] %v1684_v1 }

// kernel: reverse.0
= control target key start
LH: loop header
LB: loop body
LE: loop exit
PB: predicated region body
PF: predicated region fallthrough
CT: control target
= control target key end

     0   :  { %v72_v3 = vlaneseq  ;;  %v65_v6 = vld [vmem:[#allocation0 + $0x7] ss:$-1 sm:$0xff]  ;;  %v79_v8 = vld [vmem:[#allocation0 + $0x17] ss:$-1 sm:$0xff]  ;;  %s331_s0 = inlined_call_operand.vmem [shape: f32[4,2,16,7], index: 0, kind: input, shape index: {}]   ;;  %s332_s1 = inlined_call_operand.vmem [shape: f32[4,2,16,7], index: 1, kind: output, shape index: {}]  }
   0x1   :  { %v45_v0 = vld [vmem:[%s331_s0] sm:$0xff]  ;;  %v47_v1 = vld [vmem:[%s331_s0 + $0x8] sm:$0xff]  ;;  %v49_v2 = vld [vmem:[%s331_s0 + $0x10] sm:$0xff]  ;;  %v66_v12 = vrot.slane %v65_v6, 1  ;;  %v80_v13 = vrot.slane %v79_v8, 1 }
   0x2   :  { %46 = vst [vmem:[#allocation0 + $0x8] sm:$0xff] %v45_v0  ;;  %v51_v4 = vld [vmem:[%s331_s0 + $0x18] sm:$0xff]  ;;  %v53_v5 = vld [vmem:[%s331_s0 + $0x20] sm:$0xff]  ;;  %v55_v7 = vld [vmem:[%s331_s0 + $0x28] sm:$0xff]  ;;  %v73_v10 = vshrl.u32 %v72_v3, 7 }
   0x3   :  { %48 = vst [vmem:[#allocation0 + $0x18] sm:$0xff] %v47_v1  ;;  %v57_v9 = vld [vmem:[%s331_s0 + $0x30] sm:$0xff]  ;;  %v59_v11 = vld [vmem:[%s331_s0 + $0x38] sm:$0xff]  ;;  %v93_v14 = vld [vmem:[#allocation0 + $0x27] ss:$-1 sm:$0xff] }
   0x4   :  { %50 = vst [vmem:[#allocation0 + $0x28] sm:$0xff] %v49_v2  ;;  %vm74_vm0 = vcmp.lt.s32.totalorder %v73_v10, 7  ;;  %v107_v16 = vld [vmem:[#allocation0 + $0x37] ss:$-1 sm:$0xff]  ;;  %v94_v19 = vrot.slane %v93_v14, 1 }
   0x5   :  { %52 = vst [vmem:[#allocation0 + $0x38] sm:$0xff] %v51_v4  ;;  %v121_v22 = vld [vmem:[#allocation0 + $0x47] ss:$-1 sm:$0xff]  ;;  %v108_v24 = vrot.slane %v107_v16, 1  ;;  %v135_v28 = vld [vmem:[#allocation0 + $0x57] ss:$-1 sm:$0xff] }
   0x6   :  { %54 = vst [vmem:[#allocation0 + $0x48] sm:$0xff] %v53_v5  ;;  %v122_v29 = vrot.slane %v121_v22, 1  ;;  %v149_v32 = vld [vmem:[#allocation0 + $0x67] ss:$-1 sm:$0xff]  ;;  %v136_v33 = vrot.slane %v135_v28, 1 }
   0x7   :  { %56 = vst [vmem:[#allocation0 + $0x58] sm:$0xff] %v55_v7  ;;  %v163_v36 = vld [vmem:[#allocation0 + $0x77] ss:$-1 sm:$0xff]  ;;  %v150_v37 = vrot.slane %v149_v32, 1 }
   0x8   :  { %58 = vst [vmem:[#allocation0 + $0x68] sm:$0xff] %v57_v9  ;;  %v164_v40 = vrot.slane %v163_v36, 1 }
   0x9   :  { %60 = vst [vmem:[#allocation0 + $0x78] sm:$0xff] %v59_v11  ;;  %v70_v15 = vld [vmem:[#allocation0 + $0xf] ss:$-1 sm:$0xff] }
   0xa   :  { %67 = vst [vmem:[#allocation1] sm:$0xff] %v66_v12  ;;  %v71_v17 = vrot.slane %v70_v15, 1  ;;  %v84_v18 = vld [vmem:[#allocation0 + $0x1f] ss:$-1 sm:$0xff] }
   0xb   :  { %81 = vst [vmem:[#allocation1 + $0x8] sm:$0xff] %v80_v13  ;;  %v85_v20 = vrot.slane %v84_v18, 1  ;;  %v98_v21 = vld [vmem:[#allocation0 + $0x2f] ss:$-1 sm:$0xff] }
   0xc   :  { %75 = vst.msk [vmem:[#allocation1] sm:$0xff] %vm74_vm0, %v71_v17  ;;  %v99_v23 = vrot.slane %v98_v21, 1  ;;  %v112_v25 = vld [vmem:[#allocation0 + $0x3f] ss:$-1 sm:$0xff] }
   0xd   :  { %89 = vst.msk [vmem:[#allocation1 + $0x8] sm:$0xff] %vm74_vm0, %v85_v20  ;;  %v113_v26 = vrot.slane %v112_v25, 1  ;;  %v126_v27 = vld [vmem:[#allocation0 + $0x4f] ss:$-1 sm:$0xff] }
   0xe   :  { %95 = vst [vmem:[#allocation1 + $0x10] sm:$0xff] %v94_v19  ;;  %v140_v30 = vld [vmem:[#allocation0 + $0x5f] ss:$-1 sm:$0xff]  ;;  %v127_v31 = vrot.slane %v126_v27, 1 }
   0xf   :  { %103 = vst.msk [vmem:[#allocation1 + $0x10] sm:$0xff] %vm74_vm0, %v99_v23  ;;  %v154_v34 = vld [vmem:[#allocation0 + $0x6f] ss:$-1 sm:$0xff]  ;;  %v141_v35 = vrot.slane %v140_v30, 1 }
  0x10   :  { %109 = vst [vmem:[#allocation1 + $0x18] sm:$0xff] %v108_v24  ;;  %v168_v38 = vld [vmem:[#allocation0 + $0x7f] ss:$-1 sm:$0xff]  ;;  %v155_v39 = vrot.slane %v154_v34, 1 }
  0x11   :  { %117 = vst.msk [vmem:[#allocation1 + $0x18] sm:$0xff] %vm74_vm0, %v113_v26  ;;  %v169_v41 = vrot.slane %v168_v38, 1 }
  0x12   :  { %123 = vst [vmem:[#allocation1 + $0x20] sm:$0xff] %v122_v29 }
  0x13   :  { %131 = vst.msk [vmem:[#allocation1 + $0x20] sm:$0xff] %vm74_vm0, %v127_v31  ;;  %v216_v42 = vld [vmem:[#allocation1] sm:$0xff] }
  0x14   :  { %137 = vst [vmem:[#allocation1 + $0x28] sm:$0xff] %v136_v33  ;;  %v218_v43 = vld [vmem:[#allocation1 + $0x8] sm:$0xff] }
  0x15   :  { %145 = vst.msk [vmem:[#allocation1 + $0x28] sm:$0xff] %vm74_vm0, %v141_v35 }
  0x16   :  { %151 = vst [vmem:[#allocation1 + $0x30] sm:$0xff] %v150_v37  ;;  %v220_v44 = vld [vmem:[#allocation1 + $0x10] sm:$0xff] }
  0x17   :  { %159 = vst.msk [vmem:[#allocation1 + $0x30] sm:$0xff] %vm74_vm0, %v155_v39 }
  0x18   :  { %165 = vst [vmem:[#allocation1 + $0x38] sm:$0xff] %v164_v40  ;;  %v222_v45 = vld [vmem:[#allocation1 + $0x18] sm:$0xff] }
  0x19   :  { %173 = vst.msk [vmem:[#allocation1 + $0x38] sm:$0xff] %vm74_vm0, %v169_v41 }
  0x1a   :  { %217 = vst [vmem:[%s332_s1] sm:$0xff] %v216_v42  ;;  %v224_v46 = vld [vmem:[#allocation1 + $0x20] sm:$0xff] }
  0x1b   :  { %219 = vst [vmem:[%s332_s1 + $0x8] sm:$0xff] %v218_v43 }
  0x1c   :  { %221 = vst [vmem:[%s332_s1 + $0x10] sm:$0xff] %v220_v44  ;;  %v226_v47 = vld [vmem:[#allocation1 + $0x28] sm:$0xff] }
  0x1d   :  { %223 = vst [vmem:[%s332_s1 + $0x18] sm:$0xff] %v222_v45 }
  0x1e   :  { %225 = vst [vmem:[%s332_s1 + $0x20] sm:$0xff] %v224_v46  ;;  %v228_v48 = vld [vmem:[#allocation1 + $0x30] sm:$0xff] }
  0x1f   :  { %227 = vst [vmem:[%s332_s1 + $0x28] sm:$0xff] %v226_v47 }
  0x20   :  { %229 = vst [vmem:[%s332_s1 + $0x30] sm:$0xff] %v228_v48  ;;  %v230_v49 = vld [vmem:[#allocation1 + $0x38] sm:$0xff] }
  0x21   :  { %231 = vst [vmem:[%s332_s1 + $0x38] sm:$0xff] %v230_v49 }

// kernel: _lambda_.5
= control target key start
LH: loop header
LB: loop body
LE: loop exit
PB: predicated region body
PF: predicated region fallthrough
CT: control target
= control target key end

     0   :  { %vm48_vm0 = vcmask 1043456   ;;  %vm44_vm1 = vcmask 31744   ;;  %s228_s0 = inlined_call_operand.vmem [shape: f32[4,512], index: 0, kind: input, shape index: {}]   ;;  %s229_s1 = inlined_call_operand.vmem [shape: f32[4,512], index: 1, kind: input, shape index: {}]   ;;  %s230_s2 = inlined_call_operand.vmem [shape: f32[4,512], index: 2, kind: input, shape index: {}]   ;;  %s231_s4 = inlined_call_operand.vmem [shape: f32[8,4], index: 4, kind: input, shape index: {}]   ;;  %s232_s3 = inlined_call_operand.vmem [shape: f32[8,512], index: 3, kind: input, shape index: {}]   ;;  %s233_s5 = inlined_call_operand.vmem [shape: f32[8,512], index: 5, kind: output, shape index: {}]  }
   0x1   :  { %v21_v0 = vld [vmem:[%s228_s0 + $0x8] sm:$0xff]  ;;  %v20_v4 = vld [vmem:[%s228_s0] sm:$0xff]  ;;  %v33_v21 = vld [vmem:[%s232_s3 + $0x10] sm:$0xff] }
   0x2   :  { %v23_v1 = vld [vmem:[%s229_s1 + $0x8] sm:$0xff]  ;;  %v22_v5 = vld [vmem:[%s229_s1] sm:$0xff]  ;;  %v34_v22 = vld [vmem:[%s232_s3 + $0x18] sm:$0xff] }
   0x3   :  { %v27_v2 = vld [vmem:[%s230_s2 + $0x8] sm:$0xff]  ;;  %v25_v3 = vadd.f32 %v23_v1, %v21_v0  ;;  %v24_v6 = vadd.f32 %v22_v5, %v20_v4  ;;  %v26_v7 = vld [vmem:[%s230_s2] sm:$0xff] }
   0x4   :  { %v30_v10 = vld [vmem:[%s231_s4] sm:$0xff]  ;;  %v32_v16 = vld [vmem:[%s232_s3 + $0x8] sm:$0xff] }
   0x5   :  { %v29_v8 = vadd.f32 %v27_v2, %v25_v3  ;;  %v28_v9 = vadd.f32 %v26_v7, %v24_v6  ;;  %v31_v15 = vld [vmem:[%s232_s3] sm:$0xff] }
   0x7   :  { %39 = vst [vmem:[#allocation1 + $0x10] ss:$2 sm:$0xff] %v29_v8 }
   0x8   :  { %37 = vst [vmem:[#allocation1] ss:$2 sm:$0xff] %v28_v9 }
   0xe   :  { %v42_v11 = vld.sshfl [vmem:[#allocation1 + $0x10] sm:$0xff pattern:$0x75316420]  ;;  %v43_v12 = vld.sshfl [vmem:[#allocation1 + $0x18] sm:$0xff pattern:$0x75316420] }
   0xf   :  { %149 = vmatpush.msk.msra.mxu2 %vm48_vm0, %v42_v11  ;;  %151 = vmatpush.msk.msra.mxu3 %vm48_vm0, %v43_v12  ;;  %v40_v13 = vld.sshfl [vmem:[#allocation1] sm:$0xff pattern:$0x75316420]  ;;  %v41_v14 = vld.sshfl [vmem:[#allocation1 + $0x8] sm:$0xff pattern:$0x75316420] }
  0x10   :  { %150 = vmatmul.msk.f32.vlgmr.msra.gmra.mxu2 %vm44_vm1, %v30_v10  ;;  %152 = vmatmul.msk.f32.vlgmr.msra.gmra.mxu3 %vm44_vm1, %v30_v10 }
  0x11   :  { %145 = vmatpush.msk.msra.mxu0 %vm48_vm0, %v40_v13  ;;  %147 = vmatpush.msk.msra.mxu1 %vm48_vm0, %v41_v14 }
  0x12   :  { %146 = vmatmul.msk.f32.vlgmr.msra.gmra.mxu0 %vm44_vm1, %v30_v10  ;;  %148 = vmatmul.msk.f32.vlgmr.msra.gmra.mxu1 %vm44_vm1, %v30_v10 }
  0x8f   :  { %v74_v17 = vpop.f32.mrf.mxu0  ;;  %v94_v18 = vpop.f32.mrf.mxu1 }
  0x90   :  { %v75_v19 = vadd.f32 %v74_v17, %v31_v15  ;;  %v95_v20 = vadd.f32 %v94_v18, %v32_v16 }
  0x92   :  { %137 = vst [vmem:[%s233_s5] sm:$0xff] %v75_v19 }
  0x93   :  { %138 = vst [vmem:[%s233_s5 + $0x8] sm:$0xff] %v95_v20  ;;  %v114_v23 = vpop.f32.mrf.mxu2  ;;  %v134_v24 = vpop.f32.mrf.mxu3 }
  0x94   :  { %v115_v25 = vadd.f32 %v114_v23, %v33_v21  ;;  %v135_v26 = vadd.f32 %v134_v24, %v34_v22 }
  0x96   :  { %139 = vst [vmem:[%s233_s5 + $0x10] sm:$0xff] %v115_v25 }
  0x97   :  { %140 = vst [vmem:[%s233_s5 + $0x18] sm:$0xff] %v135_v26 }

</bundles_post_ra>
